<compile_context>
chip_gen: v6e
topology: v6e:2x2x1
jax: 0.10.0
libtpu: 0.0.40
codegen_flags: <defaults>
</compile_context>

<pallas_src>
import math
from functools import partial

import jax
import jax.numpy as jnp
from jax.experimental import pallas as pl
from jax.experimental.pallas import tpu as pltpu


# ---------------------------------------------------------------------------
# Shared layer math (pure jnp). Used BOTH inside the Pallas kernels
# (mm_dtype=bf16, approx reciprocal) and by the plain-JAX f32 reference
# (mm_dtype=f32, exact division), so only numerics differ, not formulas.
# ---------------------------------------------------------------------------
def _layernorm(x, w, b, eps=1e-5):
    mean = jnp.mean(x, axis=-1, keepdims=True)
    var = jnp.mean((x - mean) ** 2, axis=-1, keepdims=True)
    return (x - mean) * jax.lax.rsqrt(var + eps) * w + b


def _softmax_last(s, approx_recip):
    s = s - jnp.max(s, axis=-1, keepdims=True)
    p = jnp.exp(s)
    denom = jnp.sum(p, axis=-1, keepdims=True)
    if approx_recip:
        return p * pl.reciprocal(denom, approx=True)   # EUP slot, ~free
    return p / denom


def _project(x2, w, b, mm_dtype):
    """(M, K) @ (K, N) + (1, N), f32 accumulation."""
    y = jnp.dot(x2.astype(mm_dtype), w.astype(mm_dtype),
                preferred_element_type=jnp.float32)
    return y + b


def _heads_attention(q2, k2, v2, Bt, H, mm_dtype, approx_recip):
    """Scaled-dot-product attention over H heads, Bt packed batch elements.

    q2: (Bt*Sq, E), k2/v2: (Bt*Sk, E) — all f32; 1/sqrt(dh) already folded
    into the query projection. Returns (Bt*Sq, E) f32 (heads concatenated),
    ready for a single lane-dense (E, E) output projection.
    """
    E = q2.shape[-1]
    dh = E // H
    Sq = q2.shape[0] // Bt
    Sk = k2.shape[0] // Bt
    q3 = q2.reshape(Bt, Sq, E).astype(mm_dtype)
    k3 = k2.reshape(Bt, Sk, E).astype(mm_dtype)
    v3 = v2.reshape(Bt, Sk, E).astype(mm_dtype)
    outs = []
    for h in range(H):                         # static unroll over heads
        sl = slice(h * dh, (h + 1) * dh)
        s = jnp.einsum("bqd,bkd->bqk", q3[:, :, sl], k3[:, :, sl],
                       preferred_element_type=jnp.float32)
        p = _softmax_last(s, approx_recip)
        o = jnp.einsum("bqk,bkd->bqd", p.astype(mm_dtype), v3[:, :, sl],
                       preferred_element_type=jnp.float32)
        outs.append(o)
    return jnp.concatenate(outs, axis=-1).reshape(Bt * Sq, E)


def _encoder_layer(x2, w, Bt, H, mm_dtype, approx_recip):
    """PyTorch TransformerEncoderLayer (post-norm, ReLU), x2: (Bt*S, E) f32."""
    E = x2.shape[-1]
    qkv = _project(x2, w["wqkv"], w["bqkv"], mm_dtype)          # (M, 3E)
    attn = _heads_attention(qkv[:, :E], qkv[:, E:2 * E], qkv[:, 2 * E:],
                            Bt, H, mm_dtype, approx_recip)
    attn = _project(attn, w["wo"], w["bo"], mm_dtype)
    y = _layernorm(x2 + attn, w["ln1w"], w["ln1b"])
    h = jnp.maximum(_project(y, w["w1"], w["b1"], mm_dtype), 0.0)
    ff = _project(h, w["w2"], w["b2"], mm_dtype)
    return _layernorm(y + ff, w["ln2w"], w["ln2b"])


def _decoder_layer(x2, m2, w, Bt, H, mm_dtype, approx_recip):
    """PyTorch TransformerDecoderLayer (post-norm, ReLU).

    x2: (Bt*S, E) f32, m2: (Bt*Sm, E) f32.
    """
    E = x2.shape[-1]
    # Self-attention (fused QKV).
    qkv = _project(x2, w["wqkv_s"], w["bqkv_s"], mm_dtype)
    sa = _heads_attention(qkv[:, :E], qkv[:, E:2 * E], qkv[:, 2 * E:],
                          Bt, H, mm_dtype, approx_recip)
    sa = _project(sa, w["wo_s"], w["bo_s"], mm_dtype)
    y = _layernorm(x2 + sa, w["ln1w"], w["ln1b"])
    # Cross-attention: Q from decoder state, fused KV from memory.
    qc = _project(y, w["wqkv_c"][:, :E], w["bqkv_c"][:, :E], mm_dtype)
    kv = _project(m2, w["wqkv_c"][:, E:], w["bqkv_c"][:, E:], mm_dtype)
    ca = _heads_attention(qc, kv[:, :E], kv[:, E:], Bt, H, mm_dtype, approx_recip)
    ca = _project(ca, w["wo_c"], w["bo_c"], mm_dtype)
    z = _layernorm(y + ca, w["ln2w"], w["ln2b"])
    # FFN.
    h = jnp.maximum(_project(z, w["w1"], w["b1"], mm_dtype), 0.0)
    ff = _project(h, w["w2"], w["b2"], mm_dtype)
    return _layernorm(z + ff, w["ln3w"], w["ln3b"])


# ---------------------------------------------------------------------------
# Fused layer-stack Pallas kernels
# ---------------------------------------------------------------------------
def _encoder_stack_kernel(Bt, S, H, tgt_ref, pe_ref,
                          wqkv_ref, wo_ref, w1_ref, w2_ref,
                          bqkv_ref, b1_ref, e6_ref,
                          o_ref, x_scr):
    layer = pl.program_id(1)
    E = tgt_ref.shape[-1]

    @pl.when(layer == 0)
    def _init():
        # TimeEncoding: x + pe[t], broadcast over the sequence axis.
        x0 = tgt_ref[...] + pe_ref[...]                 # (Bt,S,E) + (Bt,1,E)
        x_scr[...] = x0.reshape(Bt * S, E).astype(jnp.float32)

    e6 = e6_ref[0]                                      # rows: bo,b2,ln1w,ln1b,ln2w,ln2b
    w = dict(wqkv=wqkv_ref[0], bqkv=bqkv_ref[0],
             wo=wo_ref[0], bo=e6[0:1],
             w1=w1_ref[0], b1=b1_ref[0], w2=w2_ref[0], b2=e6[1:2],
             ln1w=e6[2:3], ln1b=e6[3:4], ln2w=e6[4:5], ln2b=e6[5:6])

    out = _encoder_layer(x_scr[...], w, Bt, H, jnp.bfloat16, True)
    x_scr[...] = out

    @pl.when(layer == pl.num_programs(1) - 1)
    def _finalize():
        o_ref[...] = out.reshape(Bt, S, E).astype(o_ref.dtype)


def _decoder_stack_kernel(Bt, S, Sm, H, tgt_ref, pe_ref, mem_ref,
                          wqkv_s_ref, wqkv_c_ref, wo2_ref, w1_ref, w2_ref,
                          bqkv2_ref, b1_ref, e9_ref,
                          o_ref, x_scr):
    layer = pl.program_id(1)
    E = tgt_ref.shape[-1]

    @pl.when(layer == 0)
    def _init():
        x0 = tgt_ref[...] + pe_ref[...]
        x_scr[...] = x0.reshape(Bt * S, E).astype(jnp.float32)

    e9 = e9_ref[0]            # rows: bo_s,bo_c,b2,ln1w,ln1b,ln2w,ln2b,ln3w,ln3b
    bqkv2 = bqkv2_ref[0]      # rows: [bqkv_s, bqkv_c]
    w = dict(wqkv_s=wqkv_s_ref[0], bqkv_s=bqkv2[0:1],
             wqkv_c=wqkv_c_ref[0], bqkv_c=bqkv2[1:2],
             wo_s=wo2_ref[0, 0], bo_s=e9[0:1],
             wo_c=wo2_ref[0, 1], bo_c=e9[1:2],
             w1=w1_ref[0], b1=b1_ref[0], w2=w2_ref[0], b2=e9[2:3],
             ln1w=e9[3:4], ln1b=e9[4:5], ln2w=e9[5:6], ln2b=e9[6:7],
             ln3w=e9[7:8], ln3b=e9[8:9])

    m2 = mem_ref[...].reshape(Bt * Sm, E).astype(jnp.float32)
    out = _decoder_layer(x_scr[...], m2, w, Bt, H, jnp.bfloat16, True)
    x_scr[...] = out

    @pl.when(layer == pl.num_programs(1) - 1)
    def _finalize():
        o_ref[...] = out.reshape(Bt, S, E).astype(o_ref.dtype)


# ---------------------------------------------------------------------------
# pallas_call wrappers (single fused call per path)
# ---------------------------------------------------------------------------
ENC_PACK_KEYS = ("wqkv", "wo", "w1", "w2", "bqkv", "b1", "e6")
DEC_PACK_KEYS = ("wqkv_s", "wqkv_c", "wo2", "w1", "w2", "bqkv2", "b1", "e9")


def _layer_block_spec(stacked):
    """One layer slice of a (L, ...) stacked tensor, indexed by the layer axis."""
    nd = stacked.ndim - 1
    zeros = (0,) * nd
    return pl.BlockSpec((1,) + stacked.shape[1:], lambda b, l, _z=zeros: (l,) + _z)


def _pick_btile(B, S, target_rows=256):
    """Largest divisor of B with Bt*S <= target_rows (fills MXU rows, cuts the
    per-batch weight re-DMA multiplier). On v7x, keep >= 2 batch steps if B is
    large so both TensorCores get work."""
    best = 1
    for c in range(1, B + 1):
        if B % c == 0 and c * S <= max(target_rows, S):
            best = c
    return best


def encoder_stack_pallas(x, pe_t, packed, nhead, b_tile=None):
    B, S, E = x.shape
    assert E % nhead == 0
    L = packed["wqkv"].shape[0]
    Bt = b_tile if b_tile is not None else _pick_btile(B, S)
    assert B % Bt == 0
    w_in = [packed[k] for k in ENC_PACK_KEYS]
    w_specs = [_layer_block_spec(w) for w in w_in]
    return pl.pallas_call(
        partial(_encoder_stack_kernel, Bt, S, nhead),
        out_shape=jax.ShapeDtypeStruct((B, S, E), x.dtype),
        grid=(B // Bt, L),
        in_specs=[pl.BlockSpec((Bt, S, E), lambda b, l: (b, 0, 0)),
                  pl.BlockSpec((Bt, 1, E), lambda b, l: (b, 0, 0))] + w_specs,
        out_specs=pl.BlockSpec((Bt, S, E), lambda b, l: (b, 0, 0)),
        scratch_shapes=[pltpu.VMEM((Bt * S, E), jnp.float32)],
        compiler_params=pltpu.CompilerParams(
            dimension_semantics=("parallel", "arbitrary")),
    )(x, pe_t, *w_in)


def decoder_stack_pallas(x, pe_t, memory, packed, nhead, b_tile=None):
    B, S, E = x.shape
    Sm = memory.shape[1]
    assert E % nhead == 0
    L = packed["wqkv_s"].shape[0]
    Bt = b_tile if b_tile is not None else _pick_btile(B, S)
    assert B % Bt == 0
    w_in = [packed[k] for k in DEC_PACK_KEYS]
    w_specs = [_layer_block_spec(w) for w in w_in]
    return pl.pallas_call(
        partial(_decoder_stack_kernel, Bt, S, Sm, nhead),
        out_shape=jax.ShapeDtypeStruct((B, S, E), x.dtype),
        grid=(B // Bt, L),
        in_specs=[pl.BlockSpec((Bt, S, E), lambda b, l: (b, 0, 0)),
                  pl.BlockSpec((Bt, 1, E), lambda b, l: (b, 0, 0)),
                  pl.BlockSpec((Bt, Sm, E), lambda b, l: (b, 0, 0))] + w_specs,
        out_specs=pl.BlockSpec((Bt, S, E), lambda b, l: (b, 0, 0)),
        scratch_shapes=[pltpu.VMEM((Bt * S, E), jnp.float32)],
        compiler_params=pltpu.CompilerParams(
            dimension_semantics=("parallel", "arbitrary")),
    )(x, pe_t, memory, *w_in)


def transformer_diffusion_forward(tgt, t, memory, pe, enc_packed, dec_packed,
                                  nhead, b_tile=None):
    """Mirrors Transformer_Diffusion.forward (eval mode, no masks)."""
    pe_t = pe[t][:, None, :]                            # (B, 1, E) time embedding
    if memory is not None:
        return decoder_stack_pallas(tgt, pe_t, memory, dec_packed, nhead, b_tile)
    return encoder_stack_pallas(tgt, pe_t, enc_packed, nhead, b_tile)


# ---------------------------------------------------------------------------
# Plain-JAX reference (f32 activations, exact division, same fused weights)
# ---------------------------------------------------------------------------
def reference_forward(tgt, t, memory, pe, enc_layers, dec_layers, nhead):
    B, S, E = tgt.shape
    x2 = (tgt + pe[t][:, None, :]).reshape(B * S, E).astype(jnp.float32)
    if memory is not None:
        Sm = memory.shape[1]
        m2 = memory.reshape(B * Sm, E).astype(jnp.float32)
        for p in dec_layers:
            x2 = _decoder_layer(x2, m2, p, B, nhead, jnp.float32, False)
    else:
        for p in enc_layers:
            x2 = _encoder_layer(x2, p, B, nhead, jnp.float32, False)
    return x2.reshape(B, S, E)


# ---------------------------------------------------------------------------
# Deterministic parameter construction (fused layouts, scale folded into Q)
# ---------------------------------------------------------------------------
def make_pe(max_len, d_model):
    position = jnp.arange(max_len, dtype=jnp.float32)[:, None]
    div_term = jnp.exp(jnp.arange(0, d_model, 2, dtype=jnp.float32)
                       * (-math.log(10000.0) / d_model))
    pe = jnp.zeros((max_len, d_model), jnp.float32)
    pe = pe.at[:, 0::2].set(jnp.sin(position * div_term))
    pe = pe.at[:, 1::2].set(jnp.cos(position * div_term))
    return pe


def _bf16_round(x):
    # Round once through bf16 so the kernel's bf16 weights and the f32 reference
    # use numerically identical weight values.
    return x.astype(jnp.bfloat16).astype(jnp.float32)


def _init_attn_fused(key, E, H, suffix=""):
    dh = E // H
    scale = 1.0 / math.sqrt(dh)
    k0, k1, k2, k3 = jax.random.split(key, 4)
    wqkv = jax.random.normal(k0, (E, 3 * E), jnp.float32) * 0.05
    bqkv = jax.random.normal(k1, (1, 3 * E), jnp.float32) * 0.05
    wo = jax.random.normal(k2, (E, E), jnp.float32) * 0.05
    bo = jax.random.normal(k3, (1, E), jnp.float32) * 0.05
    # Fold the 1/sqrt(dh) softmax scale into the Q projection at init time.
    wqkv = wqkv.at[:, :E].multiply(scale)
    bqkv = bqkv.at[:, :E].multiply(scale)
    return {f"wqkv{suffix}": wqkv, f"bqkv{suffix}": bqkv,
            f"wo{suffix}": wo, f"bo{suffix}": bo}


def _init_ffn(key, E, Hff):
    k0, k1, k2, k3 = jax.random.split(key, 4)
    return {"w1": jax.random.normal(k0, (E, Hff), jnp.float32) * 0.05,
            "b1": jax.random.normal(k1, (1, Hff), jnp.float32) * 0.05,
            "w2": jax.random.normal(k2, (Hff, E), jnp.float32) * 0.05,
            "b2": jax.random.normal(k3, (1, E), jnp.float32) * 0.05}


def _init_ln(key, E, names):
    p = {}
    for i, n in enumerate(names):
        kw, kb = jax.random.split(jax.random.fold_in(key, i))
        p[n + "w"] = 1.0 + 0.1 * jax.random.normal(kw, (1, E), jnp.float32)
        p[n + "b"] = 0.1 * jax.random.normal(kb, (1, E), jnp.float32)
    return p


_ENC_MM_KEYS = ("wqkv", "wo", "w1", "w2")
_DEC_MM_KEYS = ("wqkv_s", "wqkv_c", "wo_s", "wo_c", "w1", "w2")


def init_encoder_layer(key, E, Hff, H):
    ka, kf, kl = jax.random.split(key, 3)
    p = {}
    p.update(_init_attn_fused(ka, E, H))
    p.update(_init_ffn(kf, E, Hff))
    p.update(_init_ln(kl, E, ["ln1", "ln2"]))
    for k in _ENC_MM_KEYS:
        p[k] = _bf16_round(p[k])
    return p


def init_decoder_layer(key, E, Hff, H):
    ks, kc, kf, kl = jax.random.split(key, 4)
    p = {}
    p.update(_init_attn_fused(ks, E, H, "_s"))
    p.update(_init_attn_fused(kc, E, H, "_c"))
    p.update(_init_ffn(kf, E, Hff))
    p.update(_init_ln(kl, E, ["ln1", "ln2", "ln3"]))
    for k in _DEC_MM_KEYS:
        p[k] = _bf16_round(p[k])
    return p


def pack_encoder_stack(layers):
    st = lambda k: jnp.stack([p[k] for p in layers])
    bf = lambda k: st(k).astype(jnp.bfloat16)
    e6 = jnp.stack([jnp.concatenate(
        [p["bo"], p["b2"], p["ln1w"], p["ln1b"], p["ln2w"], p["ln2b"]], axis=0)
        for p in layers])                                  # (L, 6, E)
    return dict(wqkv=bf("wqkv"), wo=bf("wo"), w1=bf("w1"), w2=bf("w2"),
                bqkv=st("bqkv"), b1=st("b1"), e6=e6)


def pack_decoder_stack(layers):
    st = lambda k: jnp.stack([p[k] for p in layers])
    bf = lambda k: st(k).astype(jnp.bfloat16)
    wo2 = jnp.stack([jnp.stack([p["wo_s"], p["wo_c"]], axis=0)
                     for p in layers]).astype(jnp.bfloat16)          # (L,2,E,E)
    bqkv2 = jnp.stack([jnp.concatenate([p["bqkv_s"], p["bqkv_c"]], axis=0)
                       for p in layers])                             # (L,2,3E)
    e9 = jnp.stack([jnp.concatenate(
        [p["bo_s"], p["bo_c"], p["b2"], p["ln1w"], p["ln1b"],
         p["ln2w"], p["ln2b"], p["ln3w"], p["ln3b"]], axis=0)
        for p in layers])                                            # (L,9,E)
    return dict(wqkv_s=bf("wqkv_s"), wqkv_c=bf("wqkv_c"), wo2=wo2,
                w1=bf("w1"), w2=bf("w2"), bqkv2=bqkv2, b1=st("b1"), e9=e9)


# ---------------------------------------------------------------------------
if __name__ == "__main__":
    B, S, Sm = 2, 8, 8
    E, Hff, L, H = 32, 64, 2, 4
    max_len = 50

    key = jax.random.PRNGKey(0)
    k_x, k_mem, k_enc, k_dec = jax.random.split(key, 4)
    tgt = jax.random.normal(k_x, (B, S, E), jnp.float32)
    memory = jax.random.normal(k_mem, (B, Sm, E), jnp.float32)
    t = jnp.array([3, 7], dtype=jnp.int32)          # one diffusion step per batch elem

    pe = make_pe(max_len, E)
    enc_layers = [init_encoder_layer(jax.random.fold_in(k_enc, i), E, Hff, H)
                  for i in range(L)]
    dec_layers = [init_decoder_layer(jax.random.fold_in(k_dec, i), E, Hff, H)
                  for i in range(L)]
    enc_packed = pack_encoder_stack(enc_layers)
    dec_packed = pack_decoder_stack(dec_layers)

    # Encoder path (memory=None) and decoder path (memory given).
    out_enc = transformer_diffusion_forward(tgt, t, None, pe, enc_packed, dec_packed, H)
    out_dec = transformer_diffusion_forward(tgt, t, memory, pe, enc_packed, dec_packed, H)
    jax.block_until_ready((out_enc, out_dec))

    ref_enc = reference_forward(tgt, t, None, pe, enc_layers, dec_layers, H)
    ref_dec = reference_forward(tgt, t, memory, pe, enc_layers, dec_layers, H)

    assert out_enc.shape == (B, S, E) and out_dec.shape == (B, S, E)
    # Kernel uses bf16 matmul operands + approx reciprocal; reference is f32 with
    # exact division (same bf16-rounded weights) -> small numerical slack.
    err_e = float(jnp.max(jnp.abs(out_enc - ref_enc)))
    err_d = float(jnp.max(jnp.abs(out_dec - ref_dec)))
    assert jnp.allclose(out_enc, ref_enc, atol=3e-2, rtol=3e-2), err_e
    assert jnp.allclose(out_dec, ref_dec, atol=3e-2, rtol=3e-2), err_d

    print("KERNEL_OK")
</pallas_src>

<mosaic_0001>
module attributes {stable_mosaic.version = 11 : i64} {
  func.func @_encoder_stack_kernel(%arg0: i32, %arg1: i32, %arg2: memref<2x8x32xf32, #tpu.memory_space<vmem>>, %arg3: memref<2x1x32xf32, #tpu.memory_space<vmem>>, %arg4: memref<1x32x96xbf16, #tpu.memory_space<vmem>>, %arg5: memref<1x32x32xbf16, #tpu.memory_space<vmem>>, %arg6: memref<1x32x64xbf16, #tpu.memory_space<vmem>>, %arg7: memref<1x64x32xbf16, #tpu.memory_space<vmem>>, %arg8: memref<1x1x96xf32, #tpu.memory_space<vmem>>, %arg9: memref<1x1x64xf32, #tpu.memory_space<vmem>>, %arg10: memref<1x6x32xf32, #tpu.memory_space<vmem>>, %arg11: memref<2x8x32xf32, #tpu.memory_space<vmem>>, %arg12: memref<16x32xf32, #tpu.memory_space<vmem>>) attributes {dimension_semantics = [#tpu.dimension_semantics<parallel>, #tpu.dimension_semantics<arbitrary>], iteration_bounds = array<i64: 1, 2>, scalar_prefetch = 0 : i64, scratch_operands = 1 : i64, tpu.core_type = #tpu.core_type<tc>, window_params = [{transform_indices = @transform_0, window_bounds = array<i64: 2, 8, 32>}, {transform_indices = @transform_1, window_bounds = array<i64: 2, 1, 32>}, {transform_indices = @transform_2, window_bounds = array<i64: 1, 32, 96>}, {transform_indices = @transform_3, window_bounds = array<i64: 1, 32, 32>}, {transform_indices = @transform_4, window_bounds = array<i64: 1, 32, 64>}, {transform_indices = @transform_5, window_bounds = array<i64: 1, 64, 32>}, {transform_indices = @transform_6, window_bounds = array<i64: 1, 1, 96>}, {transform_indices = @transform_7, window_bounds = array<i64: 1, 1, 64>}, {transform_indices = @transform_8, window_bounds = array<i64: 1, 6, 32>}, {transform_indices = @transform_9, window_bounds = array<i64: 2, 8, 32>}]} {
    %c0_i32 = arith.constant 0 : i32
    %0 = arith.cmpi eq, %arg1, %c0_i32 : i32
    %1 = arith.extui %0 : i1 to i32
    %c0_i32_0 = arith.constant 0 : i32
    %2 = arith.cmpi ne, %1, %c0_i32_0 : i32
    scf.if %2 {
      %c0_56 = arith.constant 0 : index
      %c0_57 = arith.constant 0 : index
      %c0_58 = arith.constant 0 : index
      %167 = vector.load %arg2[%c0_56, %c0_57, %c0_58] : memref<2x8x32xf32, #tpu.memory_space<vmem>>, vector<2x8x32xf32>
      %c0_59 = arith.constant 0 : index
      %c0_60 = arith.constant 0 : index
      %c0_61 = arith.constant 0 : index
      %168 = vector.load %arg3[%c0_59, %c0_60, %c0_61] : memref<2x1x32xf32, #tpu.memory_space<vmem>>, vector<2x1x32xf32>
      %169 = vector.broadcast %168 : vector<2x1x32xf32> to vector<2x8x32xf32>
      %170 = arith.addf %167, %169 : vector<2x8x32xf32>
      %171 = vector.shape_cast %170 : vector<2x8x32xf32> to vector<16x32xf32>
      %c0_62 = arith.constant 0 : index
      %c0_63 = arith.constant 0 : index
      %172 = vector.load %arg12[%c0_62, %c0_63] : memref<16x32xf32, #tpu.memory_space<vmem>>, vector<16x32xf32>
      tpu.vector_store %arg12[%c0_62, %c0_63], %171 {strides = array<i32>} : memref<16x32xf32, #tpu.memory_space<vmem>>, vector<16x32xf32>,
    } else {
    }
    %c0 = arith.constant 0 : index
    %c0_1 = arith.constant 0 : index
    %c0_2 = arith.constant 0 : index
    %3 = vector.load %arg10[%c0, %c0_1, %c0_2] : memref<1x6x32xf32, #tpu.memory_space<vmem>>, vector<1x6x32xf32>
    %4 = vector.shape_cast %3 : vector<1x6x32xf32> to vector<6x32xf32>
    %c0_3 = arith.constant 0 : index
    %c0_4 = arith.constant 0 : index
    %c0_5 = arith.constant 0 : index
    %5 = vector.load %arg4[%c0_3, %c0_4, %c0_5] : memref<1x32x96xbf16, #tpu.memory_space<vmem>>, vector<1x32x96xbf16>
    %6 = vector.shape_cast %5 : vector<1x32x96xbf16> to vector<32x96xbf16>
    %c0_6 = arith.constant 0 : index
    %c0_7 = arith.constant 0 : index
    %c0_8 = arith.constant 0 : index
    %7 = vector.load %arg8[%c0_6, %c0_7, %c0_8] : memref<1x1x96xf32, #tpu.memory_space<vmem>>, vector<1x1x96xf32>
    %8 = vector.shape_cast %7 : vector<1x1x96xf32> to vector<1x96xf32>
    %c0_9 = arith.constant 0 : index
    %c0_10 = arith.constant 0 : index
    %c0_11 = arith.constant 0 : index
    %9 = vector.load %arg5[%c0_9, %c0_10, %c0_11] : memref<1x32x32xbf16, #tpu.memory_space<vmem>>, vector<1x32x32xbf16>
    %10 = vector.shape_cast %9 : vector<1x32x32xbf16> to vector<32x32xbf16>
    %11 = vector.extract_strided_slice %4 {offsets = [0, 0], sizes = [1, 32], strides = [1, 1]} : vector<6x32xf32> to vector<1x32xf32>
    %c0_12 = arith.constant 0 : index
    %c0_13 = arith.constant 0 : index
    %c0_14 = arith.constant 0 : index
    %12 = vector.load %arg6[%c0_12, %c0_13, %c0_14] : memref<1x32x64xbf16, #tpu.memory_space<vmem>>, vector<1x32x64xbf16>
    %13 = vector.shape_cast %12 : vector<1x32x64xbf16> to vector<32x64xbf16>
    %c0_15 = arith.constant 0 : index
    %c0_16 = arith.constant 0 : index
    %c0_17 = arith.constant 0 : index
    %14 = vector.load %arg9[%c0_15, %c0_16, %c0_17] : memref<1x1x64xf32, #tpu.memory_space<vmem>>, vector<1x1x64xf32>
    %15 = vector.shape_cast %14 : vector<1x1x64xf32> to vector<1x64xf32>
    %c0_18 = arith.constant 0 : index
    %c0_19 = arith.constant 0 : index
    %c0_20 = arith.constant 0 : index
    %16 = vector.load %arg7[%c0_18, %c0_19, %c0_20] : memref<1x64x32xbf16, #tpu.memory_space<vmem>>, vector<1x64x32xbf16>
    %17 = vector.shape_cast %16 : vector<1x64x32xbf16> to vector<64x32xbf16>
    %18 = vector.extract_strided_slice %4 {offsets = [1, 0], sizes = [1, 32], strides = [1, 1]} : vector<6x32xf32> to vector<1x32xf32>
    %19 = vector.extract_strided_slice %4 {offsets = [2, 0], sizes = [1, 32], strides = [1, 1]} : vector<6x32xf32> to vector<1x32xf32>
    %20 = vector.extract_strided_slice %4 {offsets = [3, 0], sizes = [1, 32], strides = [1, 1]} : vector<6x32xf32> to vector<1x32xf32>
    %21 = vector.extract_strided_slice %4 {offsets = [4, 0], sizes = [1, 32], strides = [1, 1]} : vector<6x32xf32> to vector<1x32xf32>
    %22 = vector.extract_strided_slice %4 {offsets = [5, 0], sizes = [1, 32], strides = [1, 1]} : vector<6x32xf32> to vector<1x32xf32>
    %c0_21 = arith.constant 0 : index
    %c0_22 = arith.constant 0 : index
    %23 = vector.load %arg12[%c0_21, %c0_22] : memref<16x32xf32, #tpu.memory_space<vmem>>, vector<16x32xf32>
    %24 = arith.truncf %23 : vector<16x32xf32> to vector<16x32xbf16>
    %cst = arith.constant dense<0.000000e+00> : vector<16x96xf32>
    %25 = tpu.matmul %24, %6, %cst {dimension_numbers = #tpu.dot_dimension_numbers<[1], [0], [0], [1], [0, 0, 1, 1], [], []>} : vector<16x32xbf16>, vector<32x96xbf16>, vector<16x96xf32> -> vector<16x96xf32>
    %26 = vector.broadcast %8 : vector<1x96xf32> to vector<16x96xf32>
    %27 = arith.addf %25, %26 : vector<16x96xf32>
    %28 = vector.extract_strided_slice %27 {offsets = [0, 0], sizes = [16, 32], strides = [1, 1]} : vector<16x96xf32> to vector<16x32xf32>
    %29 = vector.extract_strided_slice %27 {offsets = [0, 32], sizes = [16, 32], strides = [1, 1]} : vector<16x96xf32> to vector<16x32xf32>
    %30 = vector.extract_strided_slice %27 {offsets = [0, 64], sizes = [16, 32], strides = [1, 1]} : vector<16x96xf32> to vector<16x32xf32>
    %31 = vector.shape_cast %28 : vector<16x32xf32> to vector<2x8x32xf32>
    %32 = arith.truncf %31 : vector<2x8x32xf32> to vector<2x8x32xbf16>
    %33 = vector.shape_cast %29 : vector<16x32xf32> to vector<2x8x32xf32>
    %34 = arith.truncf %33 : vector<2x8x32xf32> to vector<2x8x32xbf16>
    %35 = vector.shape_cast %30 : vector<16x32xf32> to vector<2x8x32xf32>
    %36 = arith.truncf %35 : vector<2x8x32xf32> to vector<2x8x32xbf16>
    %37 = vector.extract_strided_slice %32 {offsets = [0, 0, 0], sizes = [2, 8, 8], strides = [1, 1, 1]} : vector<2x8x32xbf16> to vector<2x8x8xbf16>
    %38 = vector.extract_strided_slice %34 {offsets = [0, 0, 0], sizes = [2, 8, 8], strides = [1, 1, 1]} : vector<2x8x32xbf16> to vector<2x8x8xbf16>
    "tpu.trace_start"() <{level = 10 : i32, message = "bqd,bkd->bqk"}> : () -> ()
    %cst_23 = arith.constant dense<0.000000e+00> : vector<2x8x8xf32>
    %39 = tpu.matmul %37, %38, %cst_23 {dimension_numbers = #tpu.dot_dimension_numbers<[2], [2], [1], [1], [0, 0, 0, 1, 1, 1], [0], [0]>} : vector<2x8x8xbf16>, vector<2x8x8xbf16>, vector<2x8x8xf32> -> vector<2x8x8xf32>
    "tpu.trace_stop"() : () -> ()
    %cst_24 = arith.constant dense<0xFF800000> : vector<2x8xf32>
    %40 = vector.multi_reduction <maximumf>, %39, %cst_24 [2] : vector<2x8x8xf32> to vector<2x8xf32>
    %41 = vector.shape_cast %40 : vector<2x8xf32> to vector<2x8x1xf32>
    %42 = vector.broadcast %41 : vector<2x8x1xf32> to vector<2x8x8xf32>
    %43 = arith.subf %39, %42 : vector<2x8x8xf32>
    %44 = math.exp %43 : vector<2x8x8xf32>
    %cst_25 = arith.constant dense<0.000000e+00> : vector<2x8xf32>
    %45 = vector.multi_reduction <add>, %44, %cst_25 [2] : vector<2x8x8xf32> to vector<2x8xf32>
    %46 = vector.shape_cast %45 : vector<2x8xf32> to vector<2x8x1xf32>
    %47 = tpu.reciprocal %46 {approx = true} : vector<2x8x1xf32> -> vector<2x8x1xf32>
    %48 = vector.broadcast %47 : vector<2x8x1xf32> to vector<2x8x8xf32>
    %49 = arith.mulf %44, %48 : vector<2x8x8xf32>
    %50 = arith.truncf %49 : vector<2x8x8xf32> to vector<2x8x8xbf16>
    %51 = vector.extract_strided_slice %36 {offsets = [0, 0, 0], sizes = [2, 8, 8], strides = [1, 1, 1]} : vector<2x8x32xbf16> to vector<2x8x8xbf16>
    "tpu.trace_start"() <{level = 10 : i32, message = "bqk,bkd->bqd"}> : () -> ()
    %cst_26 = arith.constant dense<0.000000e+00> : vector<2x8x8xf32>
    %52 = tpu.matmul %50, %51, %cst_26 {dimension_numbers = #tpu.dot_dimension_numbers<[2], [1], [1], [2], [0, 0, 0, 1, 1, 2], [0], [0]>} : vector<2x8x8xbf16>, vector<2x8x8xbf16>, vector<2x8x8xf32> -> vector<2x8x8xf32>
    "tpu.trace_stop"() : () -> ()
    %53 = vector.extract_strided_slice %32 {offsets = [0, 0, 8], sizes = [2, 8, 8], strides = [1, 1, 1]} : vector<2x8x32xbf16> to vector<2x8x8xbf16>
    %54 = vector.extract_strided_slice %34 {offsets = [0, 0, 8], sizes = [2, 8, 8], strides = [1, 1, 1]} : vector<2x8x32xbf16> to vector<2x8x8xbf16>
    "tpu.trace_start"() <{level = 10 : i32, message = "bqd,bkd->bqk"}> : () -> ()
    %cst_27 = arith.constant dense<0.000000e+00> : vector<2x8x8xf32>
    %55 = tpu.matmul %53, %54, %cst_27 {dimension_numbers = #tpu.dot_dimension_numbers<[2], [2], [1], [1], [0, 0, 0, 1, 1, 1], [0], [0]>} : vector<2x8x8xbf16>, vector<2x8x8xbf16>, vector<2x8x8xf32> -> vector<2x8x8xf32>
    "tpu.trace_stop"() : () -> ()
    %cst_28 = arith.constant dense<0xFF800000> : vector<2x8xf32>
    %56 = vector.multi_reduction <maximumf>, %55, %cst_28 [2] : vector<2x8x8xf32> to vector<2x8xf32>
    %57 = vector.shape_cast %56 : vector<2x8xf32> to vector<2x8x1xf32>
    %58 = vector.broadcast %57 : vector<2x8x1xf32> to vector<2x8x8xf32>
    %59 = arith.subf %55, %58 : vector<2x8x8xf32>
    %60 = math.exp %59 : vector<2x8x8xf32>
    %cst_29 = arith.constant dense<0.000000e+00> : vector<2x8xf32>
    %61 = vector.multi_reduction <add>, %60, %cst_29 [2] : vector<2x8x8xf32> to vector<2x8xf32>
    %62 = vector.shape_cast %61 : vector<2x8xf32> to vector<2x8x1xf32>
    %63 = tpu.reciprocal %62 {approx = true} : vector<2x8x1xf32> -> vector<2x8x1xf32>
    %64 = vector.broadcast %63 : vector<2x8x1xf32> to vector<2x8x8xf32>
    %65 = arith.mulf %60, %64 : vector<2x8x8xf32>
    %66 = arith.truncf %65 : vector<2x8x8xf32> to vector<2x8x8xbf16>
    %67 = vector.extract_strided_slice %36 {offsets = [0, 0, 8], sizes = [2, 8, 8], strides = [1, 1, 1]} : vector<2x8x32xbf16> to vector<2x8x8xbf16>
    "tpu.trace_start"() <{level = 10 : i32, message = "bqk,bkd->bqd"}> : () -> ()
    %cst_30 = arith.constant dense<0.000000e+00> : vector<2x8x8xf32>
    %68 = tpu.matmul %66, %67, %cst_30 {dimension_numbers = #tpu.dot_dimension_numbers<[2], [1], [1], [2], [0, 0, 0, 1, 1, 2], [0], [0]>} : vector<2x8x8xbf16>, vector<2x8x8xbf16>, vector<2x8x8xf32> -> vector<2x8x8xf32>
    "tpu.trace_stop"() : () -> ()
    %69 = vector.extract_strided_slice %32 {offsets = [0, 0, 16], sizes = [2, 8, 8], strides = [1, 1, 1]} : vector<2x8x32xbf16> to vector<2x8x8xbf16>
    %70 = vector.extract_strided_slice %34 {offsets = [0, 0, 16], sizes = [2, 8, 8], strides = [1, 1, 1]} : vector<2x8x32xbf16> to vector<2x8x8xbf16>
    "tpu.trace_start"() <{level = 10 : i32, message = "bqd,bkd->bqk"}> : () -> ()
    %cst_31 = arith.constant dense<0.000000e+00> : vector<2x8x8xf32>
    %71 = tpu.matmul %69, %70, %cst_31 {dimension_numbers = #tpu.dot_dimension_numbers<[2], [2], [1], [1], [0, 0, 0, 1, 1, 1], [0], [0]>} : vector<2x8x8xbf16>, vector<2x8x8xbf16>, vector<2x8x8xf32> -> vector<2x8x8xf32>
    "tpu.trace_stop"() : () -> ()
    %cst_32 = arith.constant dense<0xFF800000> : vector<2x8xf32>
    %72 = vector.multi_reduction <maximumf>, %71, %cst_32 [2] : vector<2x8x8xf32> to vector<2x8xf32>
    %73 = vector.shape_cast %72 : vector<2x8xf32> to vector<2x8x1xf32>
    %74 = vector.broadcast %73 : vector<2x8x1xf32> to vector<2x8x8xf32>
    %75 = arith.subf %71, %74 : vector<2x8x8xf32>
    %76 = math.exp %75 : vector<2x8x8xf32>
    %cst_33 = arith.constant dense<0.000000e+00> : vector<2x8xf32>
    %77 = vector.multi_reduction <add>, %76, %cst_33 [2] : vector<2x8x8xf32> to vector<2x8xf32>
    %78 = vector.shape_cast %77 : vector<2x8xf32> to vector<2x8x1xf32>
    %79 = tpu.reciprocal %78 {approx = true} : vector<2x8x1xf32> -> vector<2x8x1xf32>
    %80 = vector.broadcast %79 : vector<2x8x1xf32> to vector<2x8x8xf32>
    %81 = arith.mulf %76, %80 : vector<2x8x8xf32>
    %82 = arith.truncf %81 : vector<2x8x8xf32> to vector<2x8x8xbf16>
    %83 = vector.extract_strided_slice %36 {offsets = [0, 0, 16], sizes = [2, 8, 8], strides = [1, 1, 1]} : vector<2x8x32xbf16> to vector<2x8x8xbf16>
    "tpu.trace_start"() <{level = 10 : i32, message = "bqk,bkd->bqd"}> : () -> ()
    %cst_34 = arith.constant dense<0.000000e+00> : vector<2x8x8xf32>
    %84 = tpu.matmul %82, %83, %cst_34 {dimension_numbers = #tpu.dot_dimension_numbers<[2], [1], [1], [2], [0, 0, 0, 1, 1, 2], [0], [0]>} : vector<2x8x8xbf16>, vector<2x8x8xbf16>, vector<2x8x8xf32> -> vector<2x8x8xf32>
    "tpu.trace_stop"() : () -> ()
    %85 = vector.extract_strided_slice %32 {offsets = [0, 0, 24], sizes = [2, 8, 8], strides = [1, 1, 1]} : vector<2x8x32xbf16> to vector<2x8x8xbf16>
    %86 = vector.extract_strided_slice %34 {offsets = [0, 0, 24], sizes = [2, 8, 8], strides = [1, 1, 1]} : vector<2x8x32xbf16> to vector<2x8x8xbf16>
    "tpu.trace_start"() <{level = 10 : i32, message = "bqd,bkd->bqk"}> : () -> ()
    %cst_35 = arith.constant dense<0.000000e+00> : vector<2x8x8xf32>
    %87 = tpu.matmul %85, %86, %cst_35 {dimension_numbers = #tpu.dot_dimension_numbers<[2], [2], [1], [1], [0, 0, 0, 1, 1, 1], [0], [0]>} : vector<2x8x8xbf16>, vector<2x8x8xbf16>, vector<2x8x8xf32> -> vector<2x8x8xf32>
    "tpu.trace_stop"() : () -> ()
    %cst_36 = arith.constant dense<0xFF800000> : vector<2x8xf32>
    %88 = vector.multi_reduction <maximumf>, %87, %cst_36 [2] : vector<2x8x8xf32> to vector<2x8xf32>
    %89 = vector.shape_cast %88 : vector<2x8xf32> to vector<2x8x1xf32>
    %90 = vector.broadcast %89 : vector<2x8x1xf32> to vector<2x8x8xf32>
    %91 = arith.subf %87, %90 : vector<2x8x8xf32>
    %92 = math.exp %91 : vector<2x8x8xf32>
    %cst_37 = arith.constant dense<0.000000e+00> : vector<2x8xf32>
    %93 = vector.multi_reduction <add>, %92, %cst_37 [2] : vector<2x8x8xf32> to vector<2x8xf32>
    %94 = vector.shape_cast %93 : vector<2x8xf32> to vector<2x8x1xf32>
    %95 = tpu.reciprocal %94 {approx = true} : vector<2x8x1xf32> -> vector<2x8x1xf32>
    %96 = vector.broadcast %95 : vector<2x8x1xf32> to vector<2x8x8xf32>
    %97 = arith.mulf %92, %96 : vector<2x8x8xf32>
    %98 = arith.truncf %97 : vector<2x8x8xf32> to vector<2x8x8xbf16>
    %99 = vector.extract_strided_slice %36 {offsets = [0, 0, 24], sizes = [2, 8, 8], strides = [1, 1, 1]} : vector<2x8x32xbf16> to vector<2x8x8xbf16>
    "tpu.trace_start"() <{level = 10 : i32, message = "bqk,bkd->bqd"}> : () -> ()
    %cst_38 = arith.constant dense<0.000000e+00> : vector<2x8x8xf32>
    %100 = tpu.matmul %98, %99, %cst_38 {dimension_numbers = #tpu.dot_dimension_numbers<[2], [1], [1], [2], [0, 0, 0, 1, 1, 2], [0], [0]>} : vector<2x8x8xbf16>, vector<2x8x8xbf16>, vector<2x8x8xf32> -> vector<2x8x8xf32>
    "tpu.trace_stop"() : () -> ()
    %101 = tpu.concatenate %52, %68, %84, %100 in 2 : vector<2x8x8xf32>, vector<2x8x8xf32>, vector<2x8x8xf32>, vector<2x8x8xf32> -> vector<2x8x32xf32>
    %102 = vector.shape_cast %101 : vector<2x8x32xf32> to vector<16x32xf32>
    %103 = arith.truncf %102 : vector<16x32xf32> to vector<16x32xbf16>
    %cst_39 = arith.constant dense<0.000000e+00> : vector<16x32xf32>
    %104 = tpu.matmul %103, %10, %cst_39 {dimension_numbers = #tpu.dot_dimension_numbers<[1], [0], [0], [1], [0, 0, 1, 1], [], []>} : vector<16x32xbf16>, vector<32x32xbf16>, vector<16x32xf32> -> vector<16x32xf32>
    %105 = vector.broadcast %11 : vector<1x32xf32> to vector<16x32xf32>
    %106 = arith.addf %104, %105 : vector<16x32xf32>
    %107 = arith.addf %23, %106 : vector<16x32xf32>
    %cst_40 = arith.constant dense<0.000000e+00> : vector<16xf32>
    %108 = vector.multi_reduction <add>, %107, %cst_40 [1] : vector<16x32xf32> to vector<16xf32>
    %109 = vector.shape_cast %108 : vector<16xf32> to vector<16x1xf32>
    %cst_41 = arith.constant 3.200000e+01 : f32
    %110 = vector.broadcast %cst_41 : f32 to vector<16x1xf32>
    %111 = arith.divf %109, %110 : vector<16x1xf32>
    %112 = vector.broadcast %111 : vector<16x1xf32> to vector<16x32xf32>
    %113 = arith.subf %107, %112 : vector<16x32xf32>
    %114 = arith.mulf %113, %113 : vector<16x32xf32>
    %cst_42 = arith.constant dense<0.000000e+00> : vector<16xf32>
    %115 = vector.multi_reduction <add>, %114, %cst_42 [1] : vector<16x32xf32> to vector<16xf32>
    %116 = vector.shape_cast %115 : vector<16xf32> to vector<16x1xf32>
    %cst_43 = arith.constant 3.200000e+01 : f32
    %117 = vector.broadcast %cst_43 : f32 to vector<16x1xf32>
    %118 = arith.divf %116, %117 : vector<16x1xf32>
    %119 = vector.broadcast %111 : vector<16x1xf32> to vector<16x32xf32>
    %120 = arith.subf %107, %119 : vector<16x32xf32>
    %cst_44 = arith.constant 9.99999974E-6 : f32
    %121 = vector.broadcast %cst_44 : f32 to vector<16x1xf32>
    %122 = arith.addf %118, %121 : vector<16x1xf32>
    %123 = math.rsqrt %122 : vector<16x1xf32>
    %124 = vector.broadcast %123 : vector<16x1xf32> to vector<16x32xf32>
    %125 = arith.mulf %120, %124 : vector<16x32xf32>
    %126 = vector.broadcast %19 : vector<1x32xf32> to vector<16x32xf32>
    %127 = arith.mulf %125, %126 : vector<16x32xf32>
    %128 = vector.broadcast %20 : vector<1x32xf32> to vector<16x32xf32>
    %129 = arith.addf %127, %128 : vector<16x32xf32>
    %130 = arith.truncf %129 : vector<16x32xf32> to vector<16x32xbf16>
    %cst_45 = arith.constant dense<0.000000e+00> : vector<16x64xf32>
    %131 = tpu.matmul %130, %13, %cst_45 {dimension_numbers = #tpu.dot_dimension_numbers<[1], [0], [0], [1], [0, 0, 1, 1], [], []>} : vector<16x32xbf16>, vector<32x64xbf16>, vector<16x64xf32> -> vector<16x64xf32>
    %132 = vector.broadcast %15 : vector<1x64xf32> to vector<16x64xf32>
    %133 = arith.addf %131, %132 : vector<16x64xf32>
    %cst_46 = arith.constant 0.000000e+00 : f32
    %134 = vector.broadcast %cst_46 : f32 to vector<16x64xf32>
    %135 = arith.maximumf %133, %134 : vector<16x64xf32>
    %136 = arith.truncf %135 : vector<16x64xf32> to vector<16x64xbf16>
    %cst_47 = arith.constant dense<0.000000e+00> : vector<16x32xf32>
    %137 = tpu.matmul %136, %17, %cst_47 {dimension_numbers = #tpu.dot_dimension_numbers<[1], [0], [0], [1], [0, 0, 1, 1], [], []>} : vector<16x64xbf16>, vector<64x32xbf16>, vector<16x32xf32> -> vector<16x32xf32>
    %138 = vector.broadcast %18 : vector<1x32xf32> to vector<16x32xf32>
    %139 = arith.addf %137, %138 : vector<16x32xf32>
    %140 = arith.addf %129, %139 : vector<16x32xf32>
    %cst_48 = arith.constant dense<0.000000e+00> : vector<16xf32>
    %141 = vector.multi_reduction <add>, %140, %cst_48 [1] : vector<16x32xf32> to vector<16xf32>
    %142 = vector.shape_cast %141 : vector<16xf32> to vector<16x1xf32>
    %cst_49 = arith.constant 3.200000e+01 : f32
    %143 = vector.broadcast %cst_49 : f32 to vector<16x1xf32>
    %144 = arith.divf %142, %143 : vector<16x1xf32>
    %145 = vector.broadcast %144 : vector<16x1xf32> to vector<16x32xf32>
    %146 = arith.subf %140, %145 : vector<16x32xf32>
    %147 = arith.mulf %146, %146 : vector<16x32xf32>
    %cst_50 = arith.constant dense<0.000000e+00> : vector<16xf32>
    %148 = vector.multi_reduction <add>, %147, %cst_50 [1] : vector<16x32xf32> to vector<16xf32>
    %149 = vector.shape_cast %148 : vector<16xf32> to vector<16x1xf32>
    %cst_51 = arith.constant 3.200000e+01 : f32
    %150 = vector.broadcast %cst_51 : f32 to vector<16x1xf32>
    %151 = arith.divf %149, %150 : vector<16x1xf32>
    %152 = vector.broadcast %144 : vector<16x1xf32> to vector<16x32xf32>
    %153 = arith.subf %140, %152 : vector<16x32xf32>
    %cst_52 = arith.constant 9.99999974E-6 : f32
    %154 = vector.broadcast %cst_52 : f32 to vector<16x1xf32>
    %155 = arith.addf %151, %154 : vector<16x1xf32>
    %156 = math.rsqrt %155 : vector<16x1xf32>
    %157 = vector.broadcast %156 : vector<16x1xf32> to vector<16x32xf32>
    %158 = arith.mulf %153, %157 : vector<16x32xf32>
    %159 = vector.broadcast %21 : vector<1x32xf32> to vector<16x32xf32>
    %160 = arith.mulf %158, %159 : vector<16x32xf32>
    %161 = vector.broadcast %22 : vector<1x32xf32> to vector<16x32xf32>
    %162 = arith.addf %160, %161 : vector<16x32xf32>
    %c0_53 = arith.constant 0 : index
    %c0_54 = arith.constant 0 : index
    %163 = vector.load %arg12[%c0_53, %c0_54] : memref<16x32xf32, #tpu.memory_space<vmem>>, vector<16x32xf32>
    tpu.vector_store %arg12[%c0_53, %c0_54], %162 {strides = array<i32>} : memref<16x32xf32, #tpu.memory_space<vmem>>, vector<16x32xf32>,
    %c1_i32 = arith.constant 1 : i32
    %164 = arith.cmpi eq, %arg1, %c1_i32 : i32
    %165 = arith.extui %164 : i1 to i32
    %c0_i32_55 = arith.constant 0 : i32
    %166 = arith.cmpi ne, %165, %c0_i32_55 : i32
    scf.if %166 {
      %167 = vector.shape_cast %162 : vector<16x32xf32> to vector<2x8x32xf32>
      %c0_56 = arith.constant 0 : index
      %c0_57 = arith.constant 0 : index
      %c0_58 = arith.constant 0 : index
      %168 = vector.load %arg11[%c0_56, %c0_57, %c0_58] : memref<2x8x32xf32, #tpu.memory_space<vmem>>, vector<2x8x32xf32>
      tpu.vector_store %arg11[%c0_56, %c0_57, %c0_58], %167 {strides = array<i32>} : memref<2x8x32xf32, #tpu.memory_space<vmem>>, vector<2x8x32xf32>,
    } else {
    }
    return
  }
  func.func @transform_0(%arg0: i32, %arg1: i32) -> (i32, i32, i32) {
    %c0_i32 = arith.constant 0 : i32
    %c0_i32_0 = arith.constant 0 : i32
    %c0_i32_1 = arith.constant 0 : i32
    return %arg0, %c0_i32, %c0_i32_0 : i32, i32, i32
  }
  func.func @transform_1(%arg0: i32, %arg1: i32) -> (i32, i32, i32) {
    %c0_i32 = arith.constant 0 : i32
    %c0_i32_0 = arith.constant 0 : i32
    %c0_i32_1 = arith.constant 0 : i32
    return %arg0, %c0_i32, %c0_i32_0 : i32, i32, i32
  }
  func.func @transform_2(%arg0: i32, %arg1: i32) -> (i32, i32, i32) {
    %c0_i32 = arith.constant 0 : i32
    %c0_i32_0 = arith.constant 0 : i32
    %c0_i32_1 = arith.constant 0 : i32
    return %arg1, %c0_i32, %c0_i32_0 : i32, i32, i32
  }
  func.func @transform_3(%arg0: i32, %arg1: i32) -> (i32, i32, i32) {
    %c0_i32 = arith.constant 0 : i32
    %c0_i32_0 = arith.constant 0 : i32
    %c0_i32_1 = arith.constant 0 : i32
    return %arg1, %c0_i32, %c0_i32_0 : i32, i32, i32
  }
  func.func @transform_4(%arg0: i32, %arg1: i32) -> (i32, i32, i32) {
    %c0_i32 = arith.constant 0 : i32
    %c0_i32_0 = arith.constant 0 : i32
    %c0_i32_1 = arith.constant 0 : i32
    return %arg1, %c0_i32, %c0_i32_0 : i32, i32, i32
  }
  func.func @transform_5(%arg0: i32, %arg1: i32) -> (i32, i32, i32) {
    %c0_i32 = arith.constant 0 : i32
    %c0_i32_0 = arith.constant 0 : i32
    %c0_i32_1 = arith.constant 0 : i32
    return %arg1, %c0_i32, %c0_i32_0 : i32, i32, i32
  }
  func.func @transform_6(%arg0: i32, %arg1: i32) -> (i32, i32, i32) {
    %c0_i32 = arith.constant 0 : i32
    %c0_i32_0 = arith.constant 0 : i32
    %c0_i32_1 = arith.constant 0 : i32
    return %arg1, %c0_i32, %c0_i32_0 : i32, i32, i32
  }
  func.func @transform_7(%arg0: i32, %arg1: i32) -> (i32, i32, i32) {
    %c0_i32 = arith.constant 0 : i32
    %c0_i32_0 = arith.constant 0 : i32
    %c0_i32_1 = arith.constant 0 : i32
    return %arg1, %c0_i32, %c0_i32_0 : i32, i32, i32
  }
  func.func @transform_8(%arg0: i32, %arg1: i32) -> (i32, i32, i32) {
    %c0_i32 = arith.constant 0 : i32
    %c0_i32_0 = arith.constant 0 : i32
    %c0_i32_1 = arith.constant 0 : i32
    return %arg1, %c0_i32, %c0_i32_0 : i32, i32, i32
  }
  func.func @transform_9(%arg0: i32, %arg1: i32) -> (i32, i32, i32) {
    %c0_i32 = arith.constant 0 : i32
    %c0_i32_0 = arith.constant 0 : i32
    %c0_i32_1 = arith.constant 0 : i32
    return %arg0, %c0_i32, %c0_i32_0 : i32, i32, i32
  }
}

</mosaic_0001>

<bundles_post_ra>
// kernel: tpu_custom_call.1
= control target key start
LH: loop header
LB: loop body
LE: loop exit
PB: predicated region body
PF: predicated region fallthrough
CT: control target
= control target key end

     0   :  { %s2809_s0 = inlined_call_operand.hbm [shape: f32[2,8,32], index: 0, kind: input, shape index: {}]   ;;  %s2810_s1 = inlined_call_operand.vmem [shape: f32[2,1,32], index: 1, kind: input, shape index: {}]   ;;  %s2811_s2 = inlined_call_operand.vmem [shape: bf16[2,32,96], index: 2, kind: input, shape index: {}]   ;;  %s2812_s3 = inlined_call_operand.vmem [shape: bf16[2,32,32], index: 3, kind: input, shape index: {}]   ;;  %s2813_s4 = inlined_call_operand.vmem [shape: bf16[2,32,64], index: 4, kind: input, shape index: {}]   ;;  %s2814_s5 = inlined_call_operand.vmem [shape: bf16[2,64,32], index: 5, kind: input, shape index: {}]   ;;  %s2815_s6 = inlined_call_operand.vmem [shape: f32[2,1,96], index: 6, kind: input, shape index: {}]   ;;  %s2816_s7 = inlined_call_operand.vmem [shape: f32[2,1,64], index: 7, kind: input, shape index: {}]   ;;  %s2817_s8 = inlined_call_operand.vmem [shape: f32[2,6,32], index: 8, kind: input, shape index: {}]   ;;  %s2818_s9 = inlined_call_operand.hbm [shape: f32[2,8,32], index: 9, kind: output, shape index: {}]  }
   0x1   :  { %2820 = sst [smem:[#allocation9_spill]] %s2809_s0 }
   0x2   :  { %2821 = sst [smem:[#allocation10_spill]] %s2811_s2 }
   0x3   :  { %2822 = sst [smem:[#allocation11_spill]] %s2812_s3 }
   0x4   :  { %14 = vsyncpa [#allocation4], 0 }
   0x5   :  { %15 = vsyncpa [#allocation5], 0  ;;  %s2474_s30 = smov 0   ;;  %s2476_s10 = smov 0  }
   0x6   :  { %s2478_s11 = smov 0  }
   0x7 LB: > { %s2819_s12 = sadd.s32 4294967295, %s2401_s11   ;;  %s30_s13 = sadd.s32 1, %s2397_s10  ;;  %s2401_s11 = sphi %s2478_s11, %s21_s11   ;;  %s2397_s10 = sphi %s2476_s10, %s2831_s10   ;;  %s2393_s30 = sphi %s2474_s30, %s2830_s30  }
   0x8   : > { %p31_p0 = scmp.ge.s32.totalorder %s30_s13, 2  ;;  %p1958_p1 = scmp.ge.s32.totalorder %s2401_s11, 1 }
   0x9   : > { %p298_p2 = scmp.lt.s32.totalorder %s2401_s11, 3  ;;  %p2501_p4 = scmp.eq.s32.totalorder %s2819_s12, 0 }
   0xa   : > { %s2833_s13 = smov (%p31_p0, %s30_s13), 0  ;;  %s2403_s16 = smov [#allocation3]  }
   0xb   : > { %p2495_p3 = pnand %p1958_p1, %p298_p2  ;;  %s313_s17 = sshll.u32 %s2403_s16, 4  ;;  %s314_s17 = int_to_ptr.vmem [resolvable:$true] %s313_s17 }
   0xc   : > { %s2332_s18 = scalar_lea.vmem %s314_s17, 256  ;;  %p2340_p11 = scmp.lt.s32.totalorder %s314_s17, %s314_s17 }
   0xd   : > { %p2203_p5 = pneg %p2495_p3  ;;  %p2333_p8 = scmp.ne.s32.totalorder %s314_s17, %s2332_s18 }
   0xe   : > { %p2341_p12 = scmp.lt.s32.totalorder %s2332_s18, %s2332_s18 }
   0xf   : > { %p2204_p6 = pnand %p2501_p4, %p2203_p5 }
  0x10   : > { %p2342_p13 = por %p2341_p12, %p2340_p11 }
  0x11   : > { %p2323_p7 = pneg %p2204_p6 }
  0x13   : > { %p2335_p9 = pnand %p2333_p8, %p2323_p7 }
  0x15   : > { %p2336_p10 = pneg %p2335_p9 }
  0x17   : > { %p2343_p0 = pnand %p2342_p13, %p2336_p10 }
  0x19   : > { %2346 = shalt.err (!%p2343_p0)
}
  0x1a   : > { %s2404_s19 = smov 128   ;;  %s2405_s20 = smov 8  }
  0x1b   : > { %s2825_s0 = sld [smem:[#allocation9_spill]] }
  0x1d   : > { %388 = sbr.rel (%p2495_p3) target bundleno = 3994 (0xf9a), region = 56 }
  0x21   : > { %2206 = dma.hbm_to_vmem [thread:$0]  (!%p2204_p6), %s2825_s0, 256, %s314_s17, [#allocation4], %s2404_s19, %s2404_s19, %s2405_s20  }
  0x22   : > { %2384 = dma.done.wait (%p2501_p4), [#allocation4], 256  }
  0x23   : > { %2386 = vsyncadd (%p2501_p4), [#allocation4], 4294967040  ;;  %p454_p1 = scmp.lt.s32.totalorder %s2393_s30, 1  ;;  %s2826_s2 = sld [smem:[#allocation10_spill]] }
  0x24   : > { %s2827_s3 = sld [smem:[#allocation11_spill]]  ;;  %p1973_p2 = scmp.ne.s32.totalorder %s2393_s30, 0 }
  0x25   : > { %s2520_s23 = scalar_select %p454_p1, %s2393_s30, 1 }
  0x27   : > { %s2013_s24 = sshll.u32 %s2520_s23, 4  ;;  %s2016_s25 = sshll.u32 %s2520_s23, 5 }
  0x28   : > { %s2535_s18 = scalar_lea.vmem %s2813_s4, %s2013_s24  ;;  %s2540_s21 = scalar_lea.vmem %s2814_s5, %s2016_s25 }
  0x29   : > { %s458_s28 = scalar_lea.vmem %s2826_s2, %s2013_s24  ;;  %s476_s26 = scalar_lea.vmem %s2815_s6, %s2520_s23 }
  0x2a   : > { %s2530_s15 = scalar_lea.vmem %s2827_s3, %s2013_s24  ;;  %s479_s29 = scalar_lea.vmem %s2816_s7, %s2520_s23 }
  0x2b   : > { %s1972_s14 = sshll.u32 %s2520_s23, 3  ;;  %489 = sbr.rel (%p1973_p2) target bundleno = 53 (0x35), region = 64 }
  0x2c   : > { %s2554_s16 = scalar_lea.vmem %s2817_s8, %s1972_s14 }
  0x30   : > { %v490_v0 = vld [vmem:[#allocation3] sm:$0xff]  ;;  %v1974_v1 = vld [vmem:[%s2810_s1] ss:$0 sm:$0xff]  ;;  %vm508_vm0 = vcmask 261120   ;;  %v491_v2 = vld [vmem:[#allocation3 + $0x8] sm:$0xff] }
  0x31   : > { %v506_v3 = vadd.f32 %v1974_v1, %v490_v0  ;;  %v1975_v4 = vld [vmem:[%s2810_s1 + $0x1] ss:$0 sm:$0xff] }
  0x32   : > { %v507_v5 = vadd.f32 %v1975_v4, %v491_v2 }
  0x33   : > { %509 = vst.msk [vmem:[#allocation2] sm:$0xff] %vm508_vm0, %v506_v3 }
  0x34   : > { %510 = vst.msk [vmem:[#allocation2 + $0x8] sm:$0xff] %vm508_vm0, %v507_v5 }
  0x35 PF: > { %v2271_v6 = vld [vmem:[%s458_s28 + $0x8] sm:$0xff]   ;;  %v2406_v7 = vmov 0.0   ;;  %v2272_v8 = vld [vmem:[%s458_s28] sm:$0xff]   ;;  %vm2407_vm1 = vmmov 0   ;;  %vm555_vm2 = vcmask 261120   ;;  %s2408_s28 = smov 96  }
  0x36   : > { %2063 = vmatprep.subr.bf16.mxu0 %v2406_v7  ;;  %2071 = vmatprep.subr.bf16.mxu1 %v2406_v7  ;;  %v1976_v12 = vld [vmem:[%s476_s26] ss:$0 sm:$0xff]  ;;  %vm605_vm3 = vcmask 64512   ;;  %s2409_s17 = smov 64   ;;  %s2410_s19 = smov 88   ;;  %vm730_vm4 = vcmask 1043456  }
  0x37   : > { %2064 = vmatpush3.bf16.msra.mxu0 %v2271_v6  ;;  %2067 = vmatprep.mubr.msk.bf16.mxu0 %vm2407_vm1, %v2406_v7  ;;  %s2411_s20 = smov 120   ;;  %s2412_s22 = smov 56   ;;  %vm1508_vm5 = vcmask 130048   ;;  %vm1511_vm6 = vcmask 195584   ;;  %vm1710_vm7 = vcmask 523264  }
  0x38   : > { %2065 = vmatprep.subr.bf16.mxu0 %v2406_v7  ;;  %2073 = vmatprep.mubr.msk.bf16.mxu1 %vm2407_vm1, %v2406_v7  ;;  %s2413_s26 = smov 80   ;;  %s2414_s27 = smov 112  }
  0x39   : > { %s2415_s14 = smov 48   ;;  %s2416_s24 = smov 72  }
  0x3a   : > { %v2567_v9 = vld [vmem:[#allocation2] sm:$0xff]  ;;  %s2417_s25 = smov 104   ;;  %s2418_s12 = smov 40  }
  0x3b   : > { %v2569_v10 = vld [vmem:[#allocation2 + $0x8] sm:$0xff]  ;;  %2066 = vmatpush3.bf16.msra.mxu0 %v2272_v8  ;;  %s2419_s0 = smov 8   ;;  %s2420_s2 = smov 16  }
  0x3c   : > { %v536_v11 = vpack.c.bf16 %v2569_v10, %v2567_v9  ;;  %2077 = vmatprep.subr.bf16.mxu0 %v2406_v7  ;;  %s2421_s3 = smov 24   ;;  %p2008_p3 = scmp.ne.s32.totalorder %s2393_s30, 1 }
  0x3e   : > { %2068 = vmatmul.mubr.msk.bf16.vlgmr.msra.gmra.mxu0 %vm555_vm2, %v536_v11 }
  0x3f   : > { %2079 = vmatprep.mubr.msk.bf16.mxu0 %vm2407_vm1, %v2406_v7 }
  0xfe   : > { %v593_v13 = vpop.f32.mrf.mxu0 }
  0xff   : > { %v594_v14 = vadd.f32 %v1976_v12, %v593_v13 }
 0x100   : > { %v2069_v15 = vpop.f32.mrf.mxu0 }
 0x101   : > { %v2585_v16 = vpack.c.bf16 %v594_v14, %v594_v14 }
 0x102   : > { %v596_v17 = vpop.f32.mrf.mxu0 }
 0x103   : > { %v597_v18 = vadd.f32 %v1976_v12, %v596_v17  ;;  %603 = vrot.lane.b32.xlu0 %v2585_v16, %s2408_s28 }
 0x104   : > { %v2070_v19 = vpop.f32.mrf.mxu0 }
 0x105   : > { %v2588_v20 = vpack.c.bf16 %v597_v18, %v597_v18 }
 0x107   : > { %653 = vrot.lane.b32.xlu0 %v2588_v20, %s2408_s28 }
 0x175   : > { %v604_v21 = vpop.permute.xlu0 %603 }
 0x176   : > { %v610_v22 = vsel %vm605_vm3, %v604_v21, 0 }
 0x177   : > { %2072 = vmatpush3.bf16.xpose.msra.mxu1 %v610_v22 }
 0x178   : > { %2083 = vmatprep.subr.bf16.mxu1 %v2406_v7 }
 0x179   : > { %v654_v23 = vpop.permute.xlu0 %653 }
 0x17a   : > { %v659_v24 = vsel %vm605_vm3, %v654_v23, 0 }
 0x17b   : > { %2078 = vmatpush3.bf16.xpose.msra.mxu0 %v659_v24 }
 0x17c   : > { %2089 = vmatprep.subr.bf16.mxu0 %v2406_v7 }
 0x17e   : > { %2074 = vmatmul.mubr.msk.bf16.vlgmr.msra.gmra.mxu1 %vm605_vm3, %v2585_v16 }
 0x17f   : > { %2085 = vmatprep.mubr.msk.bf16.mxu1 %vm2407_vm1, %v2406_v7 }
 0x182   : > { %2080 = vmatmul.mubr.msk.bf16.vlgmr.msra.gmra.mxu0 %vm605_vm3, %v2588_v20 }
 0x183   : > { %2091 = vmatprep.mubr.msk.bf16.mxu0 %vm2407_vm1, %v2406_v7 }
 0x23e   : > { %v646_v25 = vpop.f32.mrf.mxu1 }
 0x23f   : > { %v701_v26 = vsel %vm605_vm3, %v646_v25, -inf }
 0x240   : > { %702 = vmax.xlane.f32.xlu1 %v701_v26  ;;  %v2075_v27 = vpop.f32.mrf.mxu1 }
 0x242   : > { %v649_v28 = vpop.f32.mrf.mxu1  ;;  %v695_v29 = vpop.f32.mrf.mxu0 }
 0x243   : > { %v704_v30 = vsel %vm605_vm3, %v695_v29, -inf }
 0x244   : > { %v2076_v31 = vpop.f32.mrf.mxu1  ;;  %705 = vmax.xlane.f32.xlu1 %v704_v30  ;;  %v2081_v32 = vpop.f32.mrf.mxu0 }
 0x246   : > { %v698_v33 = vpop.f32.mrf.mxu0 }
 0x248   : > { %v2082_v34 = vpop.f32.mrf.mxu0 }
 0x255   : > { %725 = vrot.lane.b32.xlu1 %v2585_v16, %s2409_s17 }
 0x259   : > { %774 = vrot.lane.b32.xlu1 %v2588_v20, %s2409_s17 }
 0x25d   : > { %824 = vrot.lane.b32.xlu1 %v2585_v16, %s2410_s19 }
 0x2c9   : > { %v703_v35 = vpop.xlane.xlu1 %702 }
 0x2ca   : > { %v707_v36 = vsub.f32 %v646_v25, %v703_v35 }
 0x2cc   : > { %v709_v37 = vmul.f32 1.442695, %v707_v36 }
 0x2cd   : > { %v706_v38 = vpop.xlane.xlu1 %705 }
 0x2ce   : > { %2281 = vpow2.f32 %v709_v37  ;;  %v708_v39 = vsub.f32 %v695_v29, %v706_v38 }
 0x2d0   : > { %v711_v40 = vmul.f32 1.442695, %v708_v39 }
 0x2d1   : > { %v726_v41 = vpop.permute.xlu1 %725 }
 0x2d2   : > { %2283 = vpow2.f32 %v711_v40  ;;  %v732_v42 = vsel %vm730_vm4, %v726_v41, 0 }
 0x2d3   : > { %2084 = vmatpush3.bf16.msra.mxu1 %v732_v42 }
 0x2d4   : > { %2095 = vmatprep.subr.bf16.mxu1 %v2406_v7 }
 0x2d5   : > { %v775_v43 = vpop.permute.xlu1 %774 }
 0x2d6   : > { %v780_v44 = vsel %vm730_vm4, %v775_v43, 0 }
 0x2d7   : > { %2090 = vmatpush3.bf16.msra.mxu0 %v780_v44 }
 0x2d8   : > { %2101 = vmatprep.subr.bf16.mxu0 %v2406_v7 }
 0x2d9   : > { %v825_v49 = vpop.permute.xlu1 %824 }
 0x2da   : > { %v830_v56 = vsel %vm605_vm3, %v825_v49, 0 }
 0x2db   : > { %v2282_v45 = vpop.eup %2281 }
 0x2dc   : > { %v713_v46 = vsel %vm605_vm3, %v2282_v45, 0.0 }
 0x2dd   : > { %714 = vadd.xlane.f32.xlu0 %v713_v46 }
 0x2df   : > { %v2284_v47 = vpop.eup %2283 }
 0x2e0   : > { %v716_v48 = vsel %vm605_vm3, %v2284_v47, 0.0 }
 0x2e1   : > { %717 = vadd.xlane.f32.xlu1 %v716_v48 }
 0x2f2   : > { %874 = vrot.lane.b32.xlu1 %v2588_v20, %s2410_s19 }
 0x2f3   : > { %822 = vrot.lane.b32.xlu0 %v2585_v16, %s2411_s20 }
 0x2f6   : > { %872 = vrot.lane.b32.xlu1 %v2588_v20, %s2411_s20 }
 0x366   : > { %v715_v50 = vpop.xlane.xlu0 %714 }
 0x367   : > { %2285 = vrcp.f32 %v715_v50 }
 0x36a   : > { %v718_v51 = vpop.xlane.xlu1 %717  ;;  %v823_v61 = vpop.permute.xlu0 %822 }
 0x36b   : > { %2287 = vrcp.f32 %v718_v51 }
 0x36e   : > { %v875_v58 = vpop.permute.xlu1 %874 }
 0x36f   : > { %v880_v60 = vsel %vm605_vm3, %v875_v58, 0 }
 0x372   : > { %v873_v62 = vpop.permute.xlu1 %872 }
 0x374   : > { %v2286_v52 = vpop.eup %2285 }
 0x375   : > { %v721_v53 = vmul.f32 %v2286_v52, %v2282_v45 }
 0x377   : > { %v723_v54 = vpack.c.bf16 %v721_v53, %v721_v53 }
 0x378   : > { %v2288_v55 = vpop.eup %2287 }
 0x379   : > { %2086 = vmatmul.mubr.msk.bf16.vlgmr.msra.gmra.mxu1 %vm605_vm3, %v723_v54  ;;  %v722_v57 = vmul.f32 %v2288_v55, %v2284_v47 }
 0x37a   : > { %2096 = vmatpush3.bf16.xpose.msra.mxu1 %v830_v56  ;;  %2097 = vmatprep.mubr.msk.bf16.mxu1 %vm2407_vm1, %v2406_v7 }
 0x37b   : > { %v724_v59 = vpack.c.bf16 %v722_v57, %v722_v57  ;;  %2107 = vmatprep.subr.bf16.mxu1 %v2406_v7 }
 0x37d   : > { %2092 = vmatmul.mubr.msk.bf16.vlgmr.msra.gmra.mxu0 %vm605_vm3, %v724_v59 }
 0x37e   : > { %2102 = vmatpush3.bf16.xpose.msra.mxu0 %v880_v60  ;;  %2103 = vmatprep.mubr.msk.bf16.mxu0 %vm2407_vm1, %v2406_v7 }
 0x37f   : > { %2113 = vmatprep.subr.bf16.mxu0 %v2406_v7 }
 0x381   : > { %2098 = vmatmul.mubr.msk.bf16.vlgmr.msra.gmra.mxu1 %vm605_vm3, %v823_v61 }
 0x382   : > { %2109 = vmatprep.mubr.msk.bf16.mxu1 %vm2407_vm1, %v2406_v7 }
 0x385   : > { %2104 = vmatmul.mubr.msk.bf16.vlgmr.msra.gmra.mxu0 %vm605_vm3, %v873_v62 }
 0x386   : > { %2115 = vmatprep.mubr.msk.bf16.mxu0 %vm2407_vm1, %v2406_v7 }
 0x439   : > { %v2633_v63 = vpop.f32.mrf.mxu1 }
 0x43b   : > { %v2087_v0 = vpop.f32.mrf.mxu1 }
 0x43d   : > { %v771_v1 = vpop.f32.mrf.mxu1  ;;  %v2635_v2 = vpop.f32.mrf.mxu0 }
 0x43f   : > { %v2088_v3 = vpop.f32.mrf.mxu1  ;;  %v2093_v4 = vpop.f32.mrf.mxu0 }
 0x441   : > { %v819_v5 = vpop.f32.mrf.mxu0  ;;  %v866_v6 = vpop.f32.mrf.mxu1 }
 0x442   : > { %v922_v8 = vsel %vm605_vm3, %v866_v6, -inf }
 0x443   : > { %923 = vmax.xlane.f32.xlu1 %v922_v8  ;;  %v2094_v11 = vpop.f32.mrf.mxu0  ;;  %v2099_v12 = vpop.f32.mrf.mxu1 }
 0x445   : > { %v869_v13 = vpop.f32.mrf.mxu1  ;;  %v916_v14 = vpop.f32.mrf.mxu0 }
 0x446   : > { %v925_v15 = vsel %vm605_vm3, %v916_v14, -inf }
 0x447   : > { %v2100_v17 = vpop.f32.mrf.mxu1  ;;  %926 = vmax.xlane.f32.xlu0 %v925_v15  ;;  %v2105_v18 = vpop.f32.mrf.mxu0 }
 0x449   : > { %v919_v19 = vpop.f32.mrf.mxu0 }
 0x44b   : > { %v2106_v21 = vpop.f32.mrf.mxu0 }
 0x454   : > { %946 = vrot.lane.b32.xlu1 %v2585_v16, %s2412_s22 }
 0x458   : > { %1044 = vrot.lane.b32.xlu1 %v2585_v16, %s2413_s26 }
 0x45d   : > { %994 = vrot.lane.b32.xlu0 %v2588_v20, %s2412_s22 }
 0x461   : > { %1042 = vrot.lane.b32.xlu0 %v2585_v16, %s2414_s27 }
 0x4cc   : > { %v924_v22 = vpop.xlane.xlu1 %923 }
 0x4cd   : > { %v928_v23 = vsub.f32 %v866_v6, %v924_v22 }
 0x4cf   : > { %v930_v24 = vmul.f32 1.442695, %v928_v23 }
 0x4d0   : > { %v947_v25 = vpop.permute.xlu1 %946  ;;  %v927_v26 = vpop.xlane.xlu0 %926 }
 0x4d1   : > { %2289 = vpow2.f32 %v930_v24  ;;  %v952_v27 = vsel %vm730_vm4, %v947_v25, 0  ;;  %v929_v28 = vsub.f32 %v916_v14, %v927_v26 }
 0x4d2   : > { %2108 = vmatpush3.bf16.msra.mxu1 %v952_v27 }
 0x4d3   : > { %v932_v29 = vmul.f32 1.442695, %v929_v28  ;;  %2119 = vmatprep.subr.bf16.mxu1 %v2406_v7 }
 0x4d4   : > { %v995_v30 = vpop.permute.xlu0 %994  ;;  %v1045_v36 = vpop.permute.xlu1 %1044 }
 0x4d5   : > { %2291 = vpow2.f32 %v932_v29  ;;  %v1000_v31 = vsel %vm730_vm4, %v995_v30, 0  ;;  %v1050_v43 = vsel %vm605_vm3, %v1045_v36, 0 }
 0x4d6   : > { %2114 = vmatpush3.bf16.msra.mxu0 %v1000_v31 }
 0x4d7   : > { %2125 = vmatprep.subr.bf16.mxu0 %v2406_v7 }
 0x4d8   : > { %v1043_v48 = vpop.permute.xlu0 %1042 }
 0x4de   : > { %v2290_v32 = vpop.eup %2289 }
 0x4df   : > { %v934_v33 = vsel %vm605_vm3, %v2290_v32, 0.0 }
 0x4e0   : > { %935 = vadd.xlane.f32.xlu1 %v934_v33 }
 0x4e2   : > { %v2292_v34 = vpop.eup %2291 }
 0x4e3   : > { %v937_v35 = vsel %vm605_vm3, %v2292_v34, 0.0 }
 0x4e4   : > { %938 = vadd.xlane.f32.xlu1 %v937_v35 }
 0x4f5   : > { %1094 = vrot.lane.b32.xlu1 %v2588_v20, %s2413_s26 }
 0x4f9   : > { %1092 = vrot.lane.b32.xlu1 %v2588_v20, %s2414_s27 }
 0x569   : > { %v936_v37 = vpop.xlane.xlu1 %935 }
 0x56a   : > { %2293 = vrcp.f32 %v936_v37 }
 0x56d   : > { %v939_v38 = vpop.xlane.xlu1 %938 }
 0x56e   : > { %2295 = vrcp.f32 %v939_v38 }
 0x571   : > { %v1095_v45 = vpop.permute.xlu1 %1094 }
 0x572   : > { %v1100_v47 = vsel %vm605_vm3, %v1095_v45, 0 }
 0x575   : > { %v1093_v49 = vpop.permute.xlu1 %1092 }
 0x577   : > { %v2294_v39 = vpop.eup %2293 }
 0x578   : > { %v942_v40 = vmul.f32 %v2294_v39, %v2290_v32 }
 0x57a   : > { %v944_v41 = vpack.c.bf16 %v942_v40, %v942_v40 }
 0x57b   : > { %v2296_v42 = vpop.eup %2295 }
 0x57c   : > { %2110 = vmatmul.mubr.msk.bf16.vlgmr.msra.gmra.mxu1 %vm605_vm3, %v944_v41  ;;  %v943_v44 = vmul.f32 %v2296_v42, %v2292_v34 }
 0x57d   : > { %2120 = vmatpush3.bf16.xpose.msra.mxu1 %v1050_v43  ;;  %2121 = vmatprep.mubr.msk.bf16.mxu1 %vm2407_vm1, %v2406_v7 }
 0x57e   : > { %v945_v46 = vpack.c.bf16 %v943_v44, %v943_v44  ;;  %2131 = vmatprep.subr.bf16.mxu1 %v2406_v7 }
 0x580   : > { %2116 = vmatmul.mubr.msk.bf16.vlgmr.msra.gmra.mxu0 %vm605_vm3, %v945_v46 }
 0x581   : > { %2126 = vmatpush3.bf16.xpose.msra.mxu0 %v1100_v47  ;;  %2127 = vmatprep.mubr.msk.bf16.mxu0 %vm2407_vm1, %v2406_v7 }
 0x582   : > { %2137 = vmatprep.subr.bf16.mxu0 %v2406_v7 }
 0x584   : > { %2122 = vmatmul.mubr.msk.bf16.vlgmr.msra.gmra.mxu1 %vm605_vm3, %v1043_v48 }
 0x585   : > { %2133 = vmatprep.mubr.msk.bf16.mxu1 %vm2407_vm1, %v2406_v7 }
 0x588   : > { %2128 = vmatmul.mubr.msk.bf16.vlgmr.msra.gmra.mxu0 %vm605_vm3, %v1093_v49 }
 0x589   : > { %2139 = vmatprep.mubr.msk.bf16.mxu0 %vm2407_vm1, %v2406_v7 }
 0x63c   : > { %v2667_v50 = vpop.f32.mrf.mxu1 }
 0x63e   : > { %v2111_v51 = vpop.f32.mrf.mxu1 }
 0x640   : > { %v991_v52 = vpop.f32.mrf.mxu1  ;;  %v2669_v53 = vpop.f32.mrf.mxu0 }
 0x641   : > { %v2256_v54 = vpack.i.bf16 %v2669_v53, %v2667_v50 }
 0x642   : > { %v2112_v55 = vpop.f32.mrf.mxu1  ;;  %v2117_v56 = vpop.f32.mrf.mxu0 }
 0x644   : > { %v1039_v57 = vpop.f32.mrf.mxu0  ;;  %v1086_v58 = vpop.f32.mrf.mxu1 }
 0x645   : > { %v1142_v59 = vsel %vm605_vm3, %v1086_v58, -inf }
 0x646   : > { %1143 = vmax.xlane.f32.xlu0 %v1142_v59  ;;  %v2118_v60 = vpop.f32.mrf.mxu0  ;;  %v2123_v61 = vpop.f32.mrf.mxu1 }
 0x648   : > { %v1089_v62 = vpop.f32.mrf.mxu1  ;;  %v1136_v0 = vpop.f32.mrf.mxu0 }
 0x649   : > { %v1145_v1 = vsel %vm605_vm3, %v1136_v0, -inf }
 0x64a   : > { %v2124_v3 = vpop.f32.mrf.mxu1  ;;  %1146 = vmax.xlane.f32.xlu1 %v1145_v1  ;;  %v2129_v4 = vpop.f32.mrf.mxu0 }
 0x64c   : > { %v1139_v5 = vpop.f32.mrf.mxu0 }
 0x64e   : > { %v2130_v6 = vpop.f32.mrf.mxu0 }
 0x65b   : > { %1166 = vrot.lane.b32.xlu1 %v2585_v16, %s2415_s14 }
 0x65f   : > { %1264 = vrot.lane.b32.xlu1 %v2585_v16, %s2416_s24 }
 0x663   : > { %1314 = vrot.lane.b32.xlu1 %v2588_v20, %s2416_s24 }
 0x667   : > { %1312 = vrot.lane.b32.xlu1 %v2588_v20, %s2417_s25 }
 0x6cf   : > { %v1144_v8 = vpop.xlane.xlu0 %1143 }
 0x6d0   : > { %v1148_v11 = vsub.f32 %v1086_v58, %v1144_v8 }
 0x6d2   : > { %v1150_v12 = vmul.f32 1.442695, %v1148_v11 }
 0x6d3   : > { %v1147_v13 = vpop.xlane.xlu1 %1146 }
 0x6d4   : > { %2297 = vpow2.f32 %v1150_v12  ;;  %v1149_v14 = vsub.f32 %v1136_v0, %v1147_v13 }
 0x6d6   : > { %v1152_v15 = vmul.f32 1.442695, %v1149_v14 }
 0x6d7   : > { %v1167_v17 = vpop.permute.xlu1 %1166 }
 0x6d8   : > { %2299 = vpow2.f32 %v1152_v15  ;;  %v1172_v18 = vsel %vm730_vm4, %v1167_v17, 0 }
 0x6d9   : > { %2132 = vmatpush3.bf16.msra.mxu1 %v1172_v18 }
 0x6da   : > { %2143 = vmatprep.subr.bf16.mxu1 %v2406_v7 }
 0x6db   : > { %v1265_v29 = vpop.permute.xlu1 %1264 }
 0x6dc   : > { %v1270_v33 = vsel %vm605_vm3, %v1265_v29, 0 }
 0x6df   : > { %v1315_v35 = vpop.permute.xlu1 %1314 }
 0x6e0   : > { %v1320_v37 = vsel %vm605_vm3, %v1315_v35, 0 }
 0x6e1   : > { %v2298_v19 = vpop.eup %2297 }
 0x6e2   : > { %v1154_v21 = vsel %vm605_vm3, %v2298_v19, 0.0 }
 0x6e3   : > { %1155 = vadd.xlane.f32.xlu0 %v1154_v21  ;;  %v1313_v39 = vpop.permute.xlu1 %1312 }
 0x6e5   : > { %v2300_v22 = vpop.eup %2299 }
 0x6e6   : > { %v1157_v23 = vsel %vm605_vm3, %v2300_v22, 0.0 }
 0x6e7   : > { %1158 = vadd.xlane.f32.xlu0 %v1157_v23  ;;  %v2274_v23 = vld [vmem:[%s2530_s15] sm:$0xff]  }
 0x6fd   : > { %1214 = vrot.lane.b32.xlu0 %v2588_v20, %s2415_s14 }
 0x701   : > { %1262 = vrot.lane.b32.xlu0 %v2585_v16, %s2417_s25 }
 0x76c   : > { %v1156_v24 = vpop.xlane.xlu0 %1155 }
 0x76d   : > { %2301 = vrcp.f32 %v1156_v24 }
 0x770   : > { %v1159_v25 = vpop.xlane.xlu0 %1158 }
 0x771   : > { %2303 = vrcp.f32 %v1159_v25 }
 0x774   : > { %v1215_v26 = vpop.permute.xlu0 %1214 }
 0x775   : > { %v1220_v27 = vsel %vm730_vm4, %v1215_v26, 0 }
 0x776   : > { %2138 = vmatpush3.bf16.msra.mxu0 %v1220_v27 }
 0x777   : > { %2149 = vmatprep.subr.bf16.mxu0 %v2406_v7 }
 0x778   : > { %v1263_v38 = vpop.permute.xlu0 %1262 }
 0x77a   : > { %v2302_v28 = vpop.eup %2301 }
 0x77b   : > { %v1162_v30 = vmul.f32 %v2302_v28, %v2298_v19 }
 0x77d   : > { %v1164_v31 = vpack.c.bf16 %v1162_v30, %v1162_v30 }
 0x77e   : > { %v2304_v32 = vpop.eup %2303 }
 0x77f   : > { %2134 = vmatmul.mubr.msk.bf16.vlgmr.msra.gmra.mxu1 %vm605_vm3, %v1164_v31  ;;  %v1163_v34 = vmul.f32 %v2304_v32, %v2300_v22  ;;  %v2273_v22 = vld [vmem:[%s2530_s15 + $0x8] sm:$0xff]  }
 0x780   : > { %2144 = vmatpush3.bf16.xpose.msra.mxu1 %v1270_v33  ;;  %2145 = vmatprep.mubr.msk.bf16.mxu1 %vm2407_vm1, %v2406_v7 }
 0x781   : > { %v1165_v36 = vpack.c.bf16 %v1163_v34, %v1163_v34  ;;  %2155 = vmatprep.subr.bf16.mxu1 %v2406_v7 }
 0x783   : > { %2140 = vmatmul.mubr.msk.bf16.vlgmr.msra.gmra.mxu0 %vm605_vm3, %v1165_v36 }
 0x784   : > { %2150 = vmatpush3.bf16.xpose.msra.mxu0 %v1320_v37  ;;  %2151 = vmatprep.mubr.msk.bf16.mxu0 %vm2407_vm1, %v2406_v7 }
 0x785   : > { %2161 = vmatprep.subr.bf16.mxu0 %v2406_v7 }
 0x787   : > { %2146 = vmatmul.mubr.msk.bf16.vlgmr.msra.gmra.mxu1 %vm605_vm3, %v1263_v38 }
 0x788   : > { %2157 = vmatprep.mubr.msk.bf16.mxu1 %vm2407_vm1, %v2406_v7 }
 0x78b   : > { %2152 = vmatmul.mubr.msk.bf16.vlgmr.msra.gmra.mxu0 %vm605_vm3, %v1313_v39 }
 0x78c   : > { %2163 = vmatprep.mubr.msk.bf16.mxu0 %vm2407_vm1, %v2406_v7 }
 0x83f   : > { %v1208_v40 = vpop.f32.mrf.mxu1 }
 0x841   : > { %v2135_v41 = vpop.f32.mrf.mxu1 }
 0x843   : > { %v1211_v42 = vpop.f32.mrf.mxu1  ;;  %v1256_v43 = vpop.f32.mrf.mxu0 }
 0x844   : > { %v2261_v61 = vpack.i.bf16 %v1256_v43, %v1208_v40 }
 0x845   : > { %v2136_v44 = vpop.f32.mrf.mxu1  ;;  %v2141_v45 = vpop.f32.mrf.mxu0 }
 0x847   : > { %v1259_v46 = vpop.f32.mrf.mxu0  ;;  %v1306_v47 = vpop.f32.mrf.mxu1 }
 0x848   : > { %v1362_v48 = vsel %vm605_vm3, %v1306_v47, -inf }
 0x849   : > { %1363 = vmax.xlane.f32.xlu0 %v1362_v48  ;;  %v2142_v49 = vpop.f32.mrf.mxu0  ;;  %v2147_v51 = vpop.f32.mrf.mxu1 }
 0x84a   : > { %v1515_v49 = vlaneseq }
 0x84b   : > { %v1309_v52 = vpop.f32.mrf.mxu1  ;;  %v1356_v55 = vpop.f32.mrf.mxu0 }
 0x84c   : > { %v1365_v56 = vsel %vm605_vm3, %v1356_v55, -inf  ;;  %v2734_v51 = vshrl.u32 %v1515_v49, 7  ;;  %v2738_v52 = vld [vmem:[%s2554_s16] sm:$0x3f] }
 0x84d   : > { %v2148_v57 = vpop.f32.mrf.mxu1  ;;  %1366 = vmax.xlane.f32.xlu1 %v1365_v56  ;;  %v2153_v58 = vpop.f32.mrf.mxu0 }
 0x84f   : > { %v1359_v59 = vpop.f32.mrf.mxu0 }
 0x851   : > { %v2154_v60 = vpop.f32.mrf.mxu0 }
 0x85e   : > { %1386 = vrot.lane.b32.xlu1 %v2585_v16, %s2418_s12 }
 0x862   : > { %2257 = vrot.lane.b32.xlu1 %v2256_v54, %s2419_s0 }
 0x866   : > { %2262 = vrot.lane.b32.xlu1 %v2261_v61, %s2420_s2 }
 0x8d2   : > { %v1364_v62 = vpop.xlane.xlu0 %1363 }
 0x8d3   : > { %v1368_v0 = vsub.f32 %v1306_v47, %v1364_v62 }
 0x8d5   : > { %v1370_v1 = vmul.f32 1.442695, %v1368_v0 }
 0x8d6   : > { %v1367_v3 = vpop.xlane.xlu1 %1366 }
 0x8d7   : > { %2305 = vpow2.f32 %v1370_v1  ;;  %v1369_v4 = vsub.f32 %v1356_v55, %v1367_v3 }
 0x8d9   : > { %v1372_v5 = vmul.f32 1.442695, %v1369_v4 }
 0x8da   : > { %v1387_v6 = vpop.permute.xlu1 %1386 }
 0x8db   : > { %2307 = vpow2.f32 %v1372_v5  ;;  %v1392_v16 = vsel %vm730_vm4, %v1387_v6, 0 }
 0x8dc   : > { %2156 = vmatpush3.bf16.msra.mxu1 %v1392_v16 }
 0x8dd   : > { %2167 = vmatprep.subr.bf16.mxu1 %v2406_v7 }
 0x8de   : > { %v2258_v33 = vpop.permute.xlu1 %2257 }
 0x8df   : > { %v2260_v35 = vunpack.i.h.bf16 %v2258_v33  ;;  %v2259_v36 = vunpack.i.l.bf16 %v2258_v33  ;;  %v2278_v33 = vld [vmem:[%s2540_s21 + $0x10] sm:$0xff]  }
 0x8e1   : > { %v1507_v40 = vsel %vm605_vm3, %v2635_v2, %v2260_v35  ;;  %v1506_v41 = vsel %vm605_vm3, %v2633_v63, %v2259_v36  ;;  %v1517_v2 = vsub.s32 0, %v2734_v51  ;;  %v2280_v35 = vld [vmem:[%s2540_s21] sm:$0xff]  }
 0x8e2   : > { %v2263_v34 = vpop.permute.xlu1 %2262  ;;  %v1999_v36 = vld [vmem:[%s479_s29] ss:$0 sm:$0xff] }
 0x8e3   : > { %v2265_v37 = vunpack.i.h.bf16 %v2263_v34  ;;  %v2264_v38 = vunpack.i.l.bf16 %v2263_v34  ;;  %v1518_v63 = vrot.slane %v2738_v52, %v1517_v2  ;;  %v2279_v34 = vld [vmem:[%s2540_s21 + $0x8] sm:$0xff]  }
 0x8e4   : > { %v2306_v8 = vpop.eup %2305 }
 0x8e5   : > { %v1374_v50 = vsel %vm605_vm3, %v2306_v8, 0.0  ;;  %v1509_v44 = vsel %vm1508_vm5, %v1506_v41, %v2264_v38  ;;  %v1510_v45 = vsel %vm1508_vm5, %v1507_v40, %v2265_v37 }
 0x8e6   : > { %1375 = vadd.xlane.f32.xlu0 %v1374_v50 }
 0x8e8   : > { %v2308_v53 = vpop.eup %2307 }
 0x8e9   : > { %v1377_v54 = vsel %vm605_vm3, %v2308_v53, 0.0 }
 0x8ea   : > { %1378 = vadd.xlane.f32.xlu0 %v1377_v54 }
 0x900   : > { %1434 = vrot.lane.b32.xlu0 %v2588_v20, %s2418_s12 }
 0x96f   : > { %v1376_v11 = vpop.xlane.xlu0 %1375 }
 0x970   : > { %2309 = vrcp.f32 %v1376_v11  ;;  %v2276_v11 = vld [vmem:[%s2535_s18] sm:$0xff]  }
 0x973   : > { %v1379_v12 = vpop.xlane.xlu0 %1378 }
 0x974   : > { %2311 = vrcp.f32 %v1379_v12  ;;  %v2277_v12 = vld [vmem:[%s2540_s21 + $0x18] sm:$0xff]  }
 0x977   : > { %v1435_v13 = vpop.permute.xlu0 %1434 }
 0x978   : > { %v1440_v14 = vsel %vm730_vm4, %v1435_v13, 0 }
 0x979   : > { %2162 = vmatpush3.bf16.msra.mxu0 %v1440_v14 }
 0x97a   : > { %2175 = vmatprep.subr.bf16.mxu0 %v2406_v7 }
 0x97d   : > { %v2310_v15 = vpop.eup %2309 }
 0x97e   : > { %v1382_v17 = vmul.f32 %v2310_v15, %v2306_v8 }
 0x980   : > { %v1384_v18 = vpack.c.bf16 %v1382_v17, %v1382_v17 }
 0x981   : > { %v2312_v19 = vpop.eup %2311 }
 0x982   : > { %2158 = vmatmul.mubr.msk.bf16.vlgmr.msra.gmra.mxu1 %vm605_vm3, %v1384_v18  ;;  %v1383_v21 = vmul.f32 %v2312_v19, %v2308_v53 }
 0x983   : > { %2171 = vmatprep.mubr.msk.bf16.mxu1 %vm2407_vm1, %v2406_v7  ;;  %2168 = vmatpush3.bf16.msra.mxu1 %v2273_v22 }
 0x984   : > { %v1385_v20 = vpack.c.bf16 %v1383_v21, %v1383_v21  ;;  %2169 = vmatprep.subr.bf16.mxu1 %v2406_v7  ;;  %v1606_v21 = vsub.s32 2, %v2734_v51 }
 0x986   : > { %2164 = vmatmul.mubr.msk.bf16.vlgmr.msra.gmra.mxu0 %vm605_vm3, %v1385_v20 }
 0x987   : > { %2179 = vmatprep.mubr.msk.bf16.mxu0 %vm2407_vm1, %v2406_v7  ;;  %2170 = vmatpush3.bf16.msra.mxu1 %v2274_v23  ;;  %v1607_v23 = vrot.slane %v2738_v52, %v1606_v21 }
 0x988   : > { %2183 = vmatprep.subr.bf16.mxu1 %v2406_v7 }
 0xa42   : > { %v1428_v24 = vpop.f32.mrf.mxu1 }
 0xa44   : > { %v2159_v25 = vpop.f32.mrf.mxu1 }
 0xa46   : > { %v1431_v26 = vpop.f32.mrf.mxu1  ;;  %v1476_v27 = vpop.f32.mrf.mxu0 }
 0xa47   : > { %v2266_v28 = vpack.i.bf16 %v1476_v27, %v1428_v24  ;;  %v1612_v24 = vsub.s32 3, %v2734_v51 }
 0xa48   : > { %v2160_v29 = vpop.f32.mrf.mxu1  ;;  %v2165_v30 = vpop.f32.mrf.mxu0 }
 0xa49   : > { %2267 = vrot.lane.b32.xlu0 %v2266_v28, %s2421_s3  ;;  %v1613_v28 = vrot.slane %v2738_v52, %v1612_v24 }
 0xa4a   : > { %v1479_v31 = vpop.f32.mrf.mxu0 }
 0xa4c   : > { %v2166_v32 = vpop.f32.mrf.mxu0 }
 0xabb   : > { %v2268_v39 = vpop.permute.xlu0 %2267 }
 0xabc   : > { %v2270_v42 = vunpack.i.h.bf16 %v2268_v39  ;;  %v2269_v43 = vunpack.i.l.bf16 %v2268_v39 }
 0xabe   : > { %v1513_v46 = vsel %vm1511_vm6, %v1510_v45, %v2270_v42  ;;  %v1512_v47 = vsel %vm1511_vm6, %v1509_v44, %v2269_v43 }
 0xabf   : > { %v1514_v48 = vpack.c.bf16 %v1513_v46, %v1512_v47 }
 0xac1   : > { %2172 = vmatmul.mubr.msk.bf16.vlgmr.msra.gmra.mxu1 %vm555_vm2, %v1514_v48 }
 0xac2   : > { %2191 = vmatprep.mubr.msk.bf16.mxu1 %vm2407_vm1, %v2406_v7  ;;  %2184 = vmatpush3.bf16.msra.mxu1 %v2277_v12  ;;  %v1791_v12 = vsub.s32 5, %v2734_v51 }
 0xac3   : > { %2185 = vmatprep.subr.bf16.mxu1 %v2406_v7 }
 0xac6   : > { %2186 = vmatpush3.bf16.msra.mxu1 %v2278_v33 }
 0xac7   : > { %2187 = vmatprep.subr.bf16.mxu1 %v2406_v7 }
 0xaca   : > { %2188 = vmatpush3.bf16.msra.mxu1 %v2279_v34 }
 0xacb   : > { %2189 = vmatprep.subr.bf16.mxu1 %v2406_v7 }
 0xace   : > { %2190 = vmatpush3.bf16.msra.mxu1 %v2280_v35 }
 0xb81   : > { %v1568_v55 = vpop.f32.mrf.mxu1 }
 0xb82   : > { %v1569_v56 = vadd.f32 %v1568_v55, %v1518_v63 }
 0xb83   : > { %v2173_v57 = vpop.f32.mrf.mxu1 }
 0xb84   : > { %v1575_v58 = vadd.f32 %v1569_v56, %v2567_v9 }
 0xb85   : > { %v1571_v59 = vpop.f32.mrf.mxu1 }
 0xb86   : > { %v1572_v60 = vadd.f32 %v1571_v59, %v1518_v63  ;;  %v1577_v61 = vsel %vm555_vm2, %v1575_v58, 0.0 }
 0xb87   : > { %v2174_v62 = vpop.f32.mrf.mxu1  ;;  %1578 = vadd.xlane.f32.xlu1 %v1577_v61 }
 0xb88   : > { %v1576_v0 = vadd.f32 %v1572_v60, %v2569_v10  ;;  %v2275_v10 = vld [vmem:[%s2535_s18 + $0x8] sm:$0xff]  }
 0xb89   : > { %2176 = vmatpush3.bf16.msra.mxu0 %v2275_v10 }
 0xb8a   : > { %v1580_v1 = vsel %vm555_vm2, %v1576_v0, 0.0  ;;  %2177 = vmatprep.subr.bf16.mxu0 %v2406_v7  ;;  %v1684_v7 = vsub.s32 1, %v2734_v51 }
 0xb8b   : > { %1581 = vadd.xlane.f32.xlu0 %v1580_v1 }
 0xb8c   : > { %v1685_v46 = vrot.slane %v2738_v52, %v1684_v7 }
 0xb8d   : > { %2178 = vmatpush3.bf16.msra.mxu0 %v2276_v11  ;;  %v1785_v11 = vsub.s32 4, %v2734_v51 }
 0xc10   : > { %v1579_v3 = vpop.xlane.xlu1 %1578 }
 0xc11   : > { %v1584_v4 = vmul.f32 0.03125, %v1579_v3 }
 0xc13   : > { %v1586_v5 = vsub.f32 %v1575_v58, %v1584_v4 }
 0xc14   : > { %v1582_v6 = vpop.xlane.xlu0 %1581 }
 0xc15   : > { %v1585_v16 = vmul.f32 0.03125, %v1582_v6  ;;  %v1588_v9 = vmul.f32 %v1586_v5, %v1586_v5 }
 0xc17   : > { %v1587_v8 = vsub.f32 %v1576_v0, %v1585_v16  ;;  %v1590_v50 = vsel %vm555_vm2, %v1588_v9, 0.0 }
 0xc18   : > { %1591 = vadd.xlane.f32.xlu0 %v1590_v50 }
 0xc19   : > { %v1589_v53 = vmul.f32 %v1587_v8, %v1587_v8 }
 0xc1b   : > { %v1593_v54 = vsel %vm555_vm2, %v1589_v53, 0.0 }
 0xc1c   : > { %1594 = vadd.xlane.f32.xlu1 %v1593_v54 }
 0xca1   : > { %v1592_v13 = vpop.xlane.xlu0 %1591 }
 0xca2   : > { %v1596_v14 = vmul.f32 0.03125, %v1592_v13  ;;  %v1786_v13 = vrot.slane %v2738_v52, %v1785_v11 }
 0xca4   : > { %v1598_v15 = vadd.f32 1e-05, %v1596_v14 }
 0xca5   : > { %v1595_v17 = vpop.xlane.xlu1 %1594 }
 0xca6   : > { %2313 = vrsqrt.f32 %v1598_v15  ;;  %v1597_v18 = vmul.f32 0.03125, %v1595_v17  ;;  %v1792_v15 = vrot.slane %v2738_v52, %v1791_v12 }
 0xca8   : > { %v1599_v19 = vadd.f32 1e-05, %v1597_v18 }
 0xcaa   : > { %2315 = vrsqrt.f32 %v1599_v19 }
 0xcb3   : > { %v2314_v20 = vpop.eup %2313 }
 0xcb4   : > { %v1602_v22 = vmul.f32 %v2314_v20, %v1586_v5 }
 0xcb6   : > { %v1608_v27 = vmul.f32 %v1607_v23, %v1602_v22 }
 0xcb7   : > { %v2316_v25 = vpop.eup %2315 }
 0xcb8   : > { %v1603_v26 = vmul.f32 %v2316_v25, %v1587_v8  ;;  %v1614_v30 = vadd.f32 %v1613_v28, %v1608_v27 }
 0xcba   : > { %v1609_v29 = vmul.f32 %v1607_v23, %v1603_v26 }
 0xcbc   : > { %v1615_v31 = vadd.f32 %v1613_v28, %v1609_v29 }
 0xcbe   : > { %v1616_v32 = vpack.c.bf16 %v1615_v31, %v1614_v30 }
 0xcc0   : > { %2180 = vmatmul.mubr.msk.bf16.vlgmr.msra.gmra.mxu0 %vm555_vm2, %v1616_v32 }
 0xd80   : > { %v1672_v37 = vpop.f32.mrf.mxu0 }
 0xd81   : > { %v1673_v39 = vadd.f32 %v1999_v36, %v1672_v37 }
 0xd82   : > { %v2181_v38 = vpop.f32.mrf.mxu0 }
 0xd83   : > { %v1679_v43 = vmax.f32 %v1673_v39, 0.0 }
 0xd84   : > { %v1675_v40 = vpop.f32.mrf.mxu0 }
 0xd85   : > { %v1676_v41 = vadd.f32 %v1999_v36, %v1675_v40 }
 0xd86   : > { %v2182_v42 = vpop.f32.mrf.mxu0 }
 0xd87   : > { %v1680_v44 = vmax.f32 %v1676_v41, 0.0 }
 0xd89   : > { %v1681_v45 = vpack.c.bf16 %v1680_v44, %v1679_v43 }
 0xd8b   : > { %2192 = vmatmul.mubr.msk.bf16.vlgmr.msra.gmra.mxu1 %vm1710_vm7, %v1681_v45 }
 0xe4b   : > { %v1748_v47 = vpop.f32.mrf.mxu1 }
 0xe4c   : > { %v1749_v48 = vadd.f32 %v1748_v47, %v1685_v46 }
 0xe4d   : > { %v2193_v49 = vpop.f32.mrf.mxu1 }
 0xe4e   : > { %v1755_v2 = vadd.f32 %v1749_v48, %v1614_v30 }
 0xe4f   : > { %v1751_v63 = vpop.f32.mrf.mxu1 }
 0xe50   : > { %v1752_v55 = vadd.f32 %v1751_v63, %v1685_v46  ;;  %v1757_v56 = vsel %vm555_vm2, %v1755_v2, 0.0 }
 0xe51   : > { %1758 = vadd.xlane.f32.xlu0 %v1757_v56  ;;  %v2194_v57 = vpop.f32.mrf.mxu1 }
 0xe52   : > { %v1756_v58 = vadd.f32 %v1752_v55, %v1615_v31 }
 0xe54   : > { %v1760_v59 = vsel %vm555_vm2, %v1756_v58, 0.0 }
 0xe55   : > { %1761 = vadd.xlane.f32.xlu1 %v1760_v59 }
 0xeda   : > { %v1759_v60 = vpop.xlane.xlu0 %1758 }
 0xedb   : > { %v1763_v61 = vmul.f32 0.03125, %v1759_v60 }
 0xedd   : > { %v1765_v62 = vsub.f32 %v1755_v2, %v1763_v61 }
 0xede   : > { %v1762_v0 = vpop.xlane.xlu1 %1761 }
 0xedf   : > { %v1764_v1 = vmul.f32 0.03125, %v1762_v0  ;;  %v1767_v3 = vmul.f32 %v1765_v62, %v1765_v62 }
 0xee1   : > { %v1766_v4 = vsub.f32 %v1756_v58, %v1764_v1  ;;  %v1769_v5 = vsel %vm555_vm2, %v1767_v3, 0.0 }
 0xee2   : > { %1770 = vadd.xlane.f32.xlu0 %v1769_v5 }
 0xee3   : > { %v1768_v6 = vmul.f32 %v1766_v4, %v1766_v4 }
 0xee5   : > { %v1772_v16 = vsel %vm555_vm2, %v1768_v6, 0.0 }
 0xee6   : > { %1773 = vadd.xlane.f32.xlu1 %v1772_v16 }
 0xf6b   : > { %v1771_v9 = vpop.xlane.xlu0 %1770 }
 0xf6c   : > { %v1775_v8 = vmul.f32 0.03125, %v1771_v9 }
 0xf6e   : > { %v1777_v50 = vadd.f32 1e-05, %v1775_v8 }
 0xf6f   : > { %v1774_v53 = vpop.xlane.xlu1 %1773 }
 0xf70   : > { %2317 = vrsqrt.f32 %v1777_v50  ;;  %v1776_v54 = vmul.f32 0.03125, %v1774_v53 }
 0xf72   : > { %v1778_v10 = vadd.f32 1e-05, %v1776_v54 }
 0xf74   : > { %2319 = vrsqrt.f32 %v1778_v10 }
 0xf7d   : > { %v2318_v14 = vpop.eup %2317 }
 0xf7e   : > { %v1781_v17 = vmul.f32 %v2318_v14, %v1765_v62 }
 0xf80   : > { %v1787_v18 = vmul.f32 %v1786_v13, %v1781_v17 }
 0xf81   : > { %v2320_v19 = vpop.eup %2319 }
 0xf82   : > { %v1793_v21 = vadd.f32 %v1792_v15, %v1787_v18  ;;  %v1782_v20 = vmul.f32 %v2320_v19, %v1766_v4 }
 0xf84   : > { %1795 = vst.msk [vmem:[#allocation2] sm:$0xff] %vm555_vm2, %v1793_v21  ;;  %v1788_v22 = vmul.f32 %v1786_v13, %v1782_v20  ;;  %1800 = sbr.rel (%p2008_p3) target bundleno = 3978 (0xf8a), region = 68 }
 0xf86   : > { %v1794_v23 = vadd.f32 %v1792_v15, %v1788_v22 }
 0xf88   : > { %1796 = vst.msk [vmem:[#allocation2 + $0x8] sm:$0xff] %vm555_vm2, %v1794_v23 }
 0xf89   : > { %1801 = vst.msk [vmem:[#allocation6] sm:$0xff] %vm555_vm2, %v1793_v21  ;;  %1802 = vst.msk [vmem:[#allocation6 + $0x8] sm:$0xff] %vm555_vm2, %v1794_v23 }
 0xf8a PF: > { %s2828_s23 = sadd.s32 4294967295, %s2401_s11   ;;  %s2422_s29 = smov [#allocation6]  }
 0xf8b   : > { %p2784_p4 = scmp.eq.s32.totalorder %s2828_s23, 1  ;;  %s1812_s16 = sshll.u32 %s2422_s29, 4  ;;  %s1813_s16 = int_to_ptr.vmem [resolvable:$true] %s1812_s16 }
 0xf8c   : > { %s2347_s28 = scalar_lea.vmem %s1813_s16, 256  ;;  %p2354_p8 = scmp.lt.s32.totalorder %s1813_s16, %s1813_s16 }
 0xf8d   : > { %p2348_p5 = scmp.ne.s32.totalorder %s1813_s16, %s2347_s28  ;;  %p2355_p9 = scmp.lt.s32.totalorder %s2347_s28, %s2347_s28 }
 0xf8f   : > { %p2349_p6 = pnand %p2348_p5, %p2784_p4  ;;  %p2356_p10 = por %p2355_p9, %p2354_p8 }
 0xf91   : > { %p2350_p7 = pneg %p2349_p6 }
 0xf93   : > { %p2357_p11 = pnand %p2356_p10, %p2350_p7 }
 0xf95   : > { %2360 = shalt.err (!%p2357_p11)
}
 0xf96   : > { %s2423_s30 = smov 128  }
 0xf97   : > { %2200 = dma.vmem_to_hbm [thread:$0]  (%p2784_p4), %s1813_s16, 256, %s2818_s9, [#allocation5], %s2423_s30, %s2423_s30, %s2419_s0  }
 0xf98   : > { %2388 = dma.done.wait (%p2784_p4), [#allocation5], 256  }
 0xf99   : > { %2390 = vsyncadd (%p2784_p4), [#allocation5], 4294967040 }
 0xf9a PF: > { %s21_s11 = sadd.s32 1, %s2401_s11   ;;  %s2830_s30 = smov %s2397_s10 }
 0xf9b   : > { %p18_p12 = scmp.ge.s32.totalorder %s21_s11, 4   ;;  %s2831_s10 = smov %s2833_s13 }
 0xf9d   :  { %20 = sbr.rel (!%p18_p12) target bundleno = 7 (0x7), region = 119 }
 0xfa2   :  { %1828 = vsyncpa [#allocation4], 1 }
 0xfa3   :  { %1830 = vsyncpa [#allocation4 + $0x1], 1 }
 0xfa4   :  { %1831 = vsyncpa [#allocation5], 1 }
 0xfa5   :  { %1833 = vsyncpa [#allocation5 + $0x1], 1 }

</bundles_post_ra>
